<compile_context>
chip_gen: v6e
topology: v6e:2x2x1
jax: 0.10.0
libtpu: 0.0.40
codegen_flags: <defaults>
</compile_context>

<pallas_src>
import math

import jax
import jax.numpy as jnp
from jax.experimental import pallas as pl
from jax.experimental.pallas import tpu as pltpu

BN_EPS = 1e-5


def gating_context_kernel(xb_ref, xc_ref, w_ref, gamma_ref, beta_ref, o_ref):
    n = xb_ref.shape[0]

    # MXU matmul: bf16 resident x block @ bf16 W column tile, f32 accumulation.
    gates = jnp.dot(xb_ref[...], w_ref[...],
                    preferred_element_type=jnp.float32)          # (N, TD) f32

    # BatchNorm1d (training-mode batch stats, biased variance) fused into a
    # single scale/shift pass — no `centered` intermediate.
    inv_n = jnp.float32(1.0 / n)
    s = jnp.sum(gates, axis=0, keepdims=True)                    # (1, TD)
    sq = jnp.sum(gates * gates, axis=0, keepdims=True)           # (1, TD)
    mean = s * inv_n
    var = jnp.maximum(sq * inv_n - mean * mean, 0.0)             # clamp >= 0
    scale = gamma_ref[...] * jax.lax.rsqrt(var + BN_EPS)         # (1, TD)
    shift = beta_ref[...] - mean * scale                         # (1, TD)
    gates = gates * scale + shift

    # sigmoid(g) = 0.5 * tanh(0.5 * g) + 0.5  (single EUP op; mul/add ride VALU).
    gate = 0.5 * jnp.tanh(0.5 * gates) + 0.5

    # Gate the streamed f32 x column tile (full f32 accuracy on x).
    o_ref[...] = (xc_ref[...] * gate).astype(o_ref.dtype)


def _vmem_capacity_bytes():
    try:
        info = pltpu.get_tpu_info()
        cap = getattr(info, "vmem_capacity_bytes", None)
        if cap:
            return int(cap)
    except Exception:
        pass
    return 64 << 20   # conservative default: v7x per-TensorCore VMEM


def _pick_feature_tile(n, d, budget):
    """Feature-tile width: largest fitting tile, preferring TD>=256 and >=2 tiles."""
    if d % 128 != 0:
        return d       # irregular / tiny feature dim: single full tile

    def fits(t):
        return (
            4 * n * d          # resident bf16 x (counted at 2 buffers, worst case)
            + 4 * d * t        # bf16 W column tile, double-buffered
            + 8 * n * t        # f32 x column tile, double-buffered
            + 8 * n * t        # f32 out tile, double-buffered
            + 12 * n * t       # f32 compute intermediates (gates, squares, gate)
            + 64 * t           # gamma/beta tiles + slack
        ) <= budget

    candidates = [t for t in (2048, 1024, 512, 256, 128)
                  if t <= d and d % t == 0 and fits(t)]
    if not candidates:
        return 128
    # Prefer >=2 feature tiles (megacore split on v7x) as long as TD stays >= 256
    # (a 128-wide tile only half-fills the 256-wide MXU on v6e/v7x).
    for t in candidates:               # candidates are sorted descending
        if d // t >= 2 and t >= 256:
            return t
    return candidates[0]


def gating_context(x, w, gamma, beta):
    """x: (N, D) f32; w: (D, D); gamma/beta: (D,) or (1, D). Returns (N, D) f32."""
    n, d = x.shape
    assert w.shape == (d, d)

    gamma2 = jnp.reshape(gamma, (1, d)).astype(jnp.float32)
    beta2 = jnp.reshape(beta, (1, d)).astype(jnp.float32)
    x_f32 = x.astype(jnp.float32)
    x_bf16 = x_f32.astype(jnp.bfloat16)     # one-time cast, outside the kernel
    w_bf16 = w.astype(jnp.bfloat16)

    cap = _vmem_capacity_bytes()
    vmem_limit = min(int(cap * 0.85), 120 << 20)
    budget = max(vmem_limit - (8 << 20), 8 << 20)   # headroom for internal scratch

    td = _pick_feature_tile(n, d, budget)
    grid = (d // td,)

    bytes_accessed = (2 * n * d          # bf16 x (resident matmul operand)
                      + 4 * n * d        # f32 x column tiles (gating multiply)
                      + 2 * d * d        # bf16 W
                      + 2 * 4 * d        # gamma, beta
                      + 4 * n * d)       # out
    cost = pl.CostEstimate(flops=2 * n * d * d,
                           transcendentals=n * d,      # one tanh per element
                           bytes_accessed=bytes_accessed)
    cparams = pltpu.CompilerParams(
        dimension_semantics=("parallel",),              # megacore split on v7x
        vmem_limit_bytes=vmem_limit,
    )

    def build(single_buffer_x):
        if single_buffer_x:
            # Constant index map -> one buffer is enough; saves N*D*2 bytes of VMEM.
            x_spec = pl.BlockSpec((n, d), lambda j: (0, 0),
                                  pipeline_mode=pl.Buffered(1))
        else:
            x_spec = pl.BlockSpec((n, d), lambda j: (0, 0))
        return pl.pallas_call(
            gating_context_kernel,
            out_shape=jax.ShapeDtypeStruct((n, d), x_f32.dtype),
            grid=grid,
            in_specs=[
                x_spec,                                        # bf16 x, resident
                pl.BlockSpec((n, td), lambda j: (0, j)),       # f32 x column tile
                pl.BlockSpec((d, td), lambda j: (0, j)),       # bf16 W column tile
                pl.BlockSpec((1, td), lambda j: (0, j)),       # gamma tile
                pl.BlockSpec((1, td), lambda j: (0, j)),       # beta tile
            ],
            out_specs=pl.BlockSpec((n, td), lambda j: (0, j)),
            compiler_params=cparams,
            cost_estimate=cost,
        )(x_bf16, x_f32, w_bf16, gamma2, beta2)

    try:
        return build(True)
    except Exception:
        # Fallback if this runtime rejects pipeline_mode=Buffered(1); the VMEM
        # model already assumed two x buffers, so this is always safe.
        return build(False)


if __name__ == "__main__":
    # Small but tile-exercising shapes: D=512 -> two 256-wide feature tiles.
    N, DIM = 64, 512

    key = jax.random.PRNGKey(0)
    kx, kw = jax.random.split(key)

    # Deterministic init (matches nn.Parameter(randn(dim,dim)/sqrt(dim))).
    x = jax.random.normal(kx, (N, DIM), dtype=jnp.float32)
    w = jax.random.normal(kw, (DIM, DIM), dtype=jnp.float32) * (1.0 / math.sqrt(DIM))
    gamma = jnp.ones((DIM,), dtype=jnp.float32)    # BatchNorm1d default weight
    beta = jnp.zeros((DIM,), dtype=jnp.float32)    # BatchNorm1d default bias

    out = gating_context(x, w, gamma, beta)
    jax.block_until_ready(out)

    # Pure-JAX f32 reference of the same math.
    gates_ref = x @ w
    mean = gates_ref.mean(axis=0, keepdims=True)
    var = ((gates_ref - mean) ** 2).mean(axis=0, keepdims=True)
    gates_ref = (gates_ref - mean) / jnp.sqrt(var + BN_EPS) * gamma + beta
    ref = x * jax.nn.sigmoid(gates_ref)

    # Tolerance loosened vs. the f32 reference: bf16 MXU inputs (x and W).
    # BN renormalization absorbs most of the matmul rounding error.
    assert jnp.allclose(out, ref, atol=3e-2, rtol=3e-2), "mismatch vs reference"

    print("KERNEL_OK")
</pallas_src>

<mosaic_0001>
module attributes {stable_mosaic.version = 11 : i64} {
  func.func @gating_context_kernel(%arg0: i32, %arg1: memref<64x512xbf16, #tpu.memory_space<vmem>>, %arg2: memref<64x256xf32, #tpu.memory_space<vmem>>, %arg3: memref<512x256xbf16, #tpu.memory_space<vmem>>, %arg4: memref<1x256xf32, #tpu.memory_space<vmem>>, %arg5: memref<1x256xf32, #tpu.memory_space<vmem>>, %arg6: memref<64x256xf32, #tpu.memory_space<vmem>>) attributes {dimension_semantics = [#tpu.dimension_semantics<parallel>], iteration_bounds = array<i64: 2>, scalar_prefetch = 0 : i64, scratch_operands = 0 : i64, tpu.core_type = #tpu.core_type<tc>, window_params = [{pipeline_mode = #tpu.pipeline_mode<synchronous>, transform_indices = @transform_0, window_bounds = array<i64: 64, 512>}, {transform_indices = @transform_1, window_bounds = array<i64: 64, 256>}, {transform_indices = @transform_2, window_bounds = array<i64: 512, 256>}, {transform_indices = @transform_3, window_bounds = array<i64: 1, 256>}, {transform_indices = @transform_4, window_bounds = array<i64: 1, 256>}, {transform_indices = @transform_5, window_bounds = array<i64: 64, 256>}]} {
    %c0 = arith.constant 0 : index
    %c0_0 = arith.constant 0 : index
    %0 = vector.load %arg1[%c0, %c0_0] : memref<64x512xbf16, #tpu.memory_space<vmem>>, vector<64x512xbf16>
    %c0_1 = arith.constant 0 : index
    %c0_2 = arith.constant 0 : index
    %1 = vector.load %arg3[%c0_1, %c0_2] : memref<512x256xbf16, #tpu.memory_space<vmem>>, vector<512x256xbf16>
    %cst = arith.constant dense<0.000000e+00> : vector<64x256xf32>
    %2 = tpu.matmul %0, %1, %cst {dimension_numbers = #tpu.dot_dimension_numbers<[1], [0], [0], [1], [0, 0, 1, 1], [], []>} : vector<64x512xbf16>, vector<512x256xbf16>, vector<64x256xf32> -> vector<64x256xf32>
    %cst_3 = arith.constant dense<0.000000e+00> : vector<256xf32>
    %3 = vector.multi_reduction <add>, %2, %cst_3 [0] : vector<64x256xf32> to vector<256xf32>
    %4 = vector.shape_cast %3 : vector<256xf32> to vector<1x256xf32>
    %5 = arith.mulf %2, %2 : vector<64x256xf32>
    %cst_4 = arith.constant dense<0.000000e+00> : vector<256xf32>
    %6 = vector.multi_reduction <add>, %5, %cst_4 [0] : vector<64x256xf32> to vector<256xf32>
    %7 = vector.shape_cast %6 : vector<256xf32> to vector<1x256xf32>
    %cst_5 = arith.constant 1.562500e-02 : f32
    %8 = vector.broadcast %cst_5 : f32 to vector<1x256xf32>
    %9 = arith.mulf %4, %8 : vector<1x256xf32>
    %cst_6 = arith.constant 1.562500e-02 : f32
    %10 = vector.broadcast %cst_6 : f32 to vector<1x256xf32>
    %11 = arith.mulf %7, %10 : vector<1x256xf32>
    %12 = arith.mulf %9, %9 : vector<1x256xf32>
    %13 = arith.subf %11, %12 : vector<1x256xf32>
    %cst_7 = arith.constant 0.000000e+00 : f32
    %14 = vector.broadcast %cst_7 : f32 to vector<1x256xf32>
    %15 = arith.maximumf %13, %14 : vector<1x256xf32>
    %c0_8 = arith.constant 0 : index
    %c0_9 = arith.constant 0 : index
    %16 = vector.load %arg4[%c0_8, %c0_9] : memref<1x256xf32, #tpu.memory_space<vmem>>, vector<1x256xf32>
    %cst_10 = arith.constant 9.99999974E-6 : f32
    %17 = vector.broadcast %cst_10 : f32 to vector<1x256xf32>
    %18 = arith.addf %15, %17 : vector<1x256xf32>
    %19 = math.rsqrt %18 : vector<1x256xf32>
    %20 = arith.mulf %16, %19 : vector<1x256xf32>
    %c0_11 = arith.constant 0 : index
    %c0_12 = arith.constant 0 : index
    %21 = vector.load %arg5[%c0_11, %c0_12] : memref<1x256xf32, #tpu.memory_space<vmem>>, vector<1x256xf32>
    %22 = arith.mulf %9, %20 : vector<1x256xf32>
    %23 = arith.subf %21, %22 : vector<1x256xf32>
    %24 = vector.broadcast %20 : vector<1x256xf32> to vector<64x256xf32>
    %25 = arith.mulf %2, %24 : vector<64x256xf32>
    %26 = vector.broadcast %23 : vector<1x256xf32> to vector<64x256xf32>
    %27 = arith.addf %25, %26 : vector<64x256xf32>
    %cst_13 = arith.constant 5.000000e-01 : f32
    %28 = vector.broadcast %cst_13 : f32 to vector<64x256xf32>
    %29 = arith.mulf %28, %27 : vector<64x256xf32>
    %30 = math.tanh %29 : vector<64x256xf32>
    %cst_14 = arith.constant 5.000000e-01 : f32
    %31 = vector.broadcast %cst_14 : f32 to vector<64x256xf32>
    %32 = arith.mulf %31, %30 : vector<64x256xf32>
    %cst_15 = arith.constant 5.000000e-01 : f32
    %33 = vector.broadcast %cst_15 : f32 to vector<64x256xf32>
    %34 = arith.addf %32, %33 : vector<64x256xf32>
    %c0_16 = arith.constant 0 : index
    %c0_17 = arith.constant 0 : index
    %35 = vector.load %arg2[%c0_16, %c0_17] : memref<64x256xf32, #tpu.memory_space<vmem>>, vector<64x256xf32>
    %36 = arith.mulf %35, %34 : vector<64x256xf32>
    %c0_18 = arith.constant 0 : index
    %c0_19 = arith.constant 0 : index
    %37 = vector.load %arg6[%c0_18, %c0_19] : memref<64x256xf32, #tpu.memory_space<vmem>>, vector<64x256xf32>
    tpu.vector_store %arg6[%c0_18, %c0_19], %36 {strides = array<i32>} : memref<64x256xf32, #tpu.memory_space<vmem>>, vector<64x256xf32>,
    return
  }
  func.func @transform_0(%arg0: i32) -> (i32, i32) {
    %c0_i32 = arith.constant 0 : i32
    %c0_i32_0 = arith.constant 0 : i32
    %c0_i32_1 = arith.constant 0 : i32
    return %c0_i32, %c0_i32_0 : i32, i32
  }
  func.func @transform_1(%arg0: i32) -> (i32, i32) {
    %c0_i32 = arith.constant 0 : i32
    %c0_i32_0 = arith.constant 0 : i32
    return %c0_i32, %arg0 : i32, i32
  }
  func.func @transform_2(%arg0: i32) -> (i32, i32) {
    %c0_i32 = arith.constant 0 : i32
    %c0_i32_0 = arith.constant 0 : i32
    return %c0_i32, %arg0 : i32, i32
  }
  func.func @transform_3(%arg0: i32) -> (i32, i32) {
    %c0_i32 = arith.constant 0 : i32
    %c0_i32_0 = arith.constant 0 : i32
    return %c0_i32, %arg0 : i32, i32
  }
  func.func @transform_4(%arg0: i32) -> (i32, i32) {
    %c0_i32 = arith.constant 0 : i32
    %c0_i32_0 = arith.constant 0 : i32
    return %c0_i32, %arg0 : i32, i32
  }
  func.func @transform_5(%arg0: i32) -> (i32, i32) {
    %c0_i32 = arith.constant 0 : i32
    %c0_i32_0 = arith.constant 0 : i32
    return %c0_i32, %arg0 : i32, i32
  }
}

module attributes {stable_mosaic.version = 11 : i64} {
  func.func @gating_context_kernel(%arg0: i32, %arg1: memref<64x512xbf16, #tpu.memory_space<vmem>>, %arg2: memref<64x256xf32, #tpu.memory_space<vmem>>, %arg3: memref<512x256xbf16, #tpu.memory_space<vmem>>, %arg4: memref<1x256xf32, #tpu.memory_space<vmem>>, %arg5: memref<1x256xf32, #tpu.memory_space<vmem>>, %arg6: memref<64x256xf32, #tpu.memory_space<vmem>>) attributes {dimension_semantics = [#tpu.dimension_semantics<parallel>], iteration_bounds = array<i64: 2>, scalar_prefetch = 0 : i64, scratch_operands = 0 : i64, tpu.core_type = #tpu.core_type<tc>, window_params = [{pipeline_mode = #tpu.pipeline_mode<synchronous>, transform_indices = @transform_0, window_bounds = array<i64: 64, 512>}, {transform_indices = @transform_1, window_bounds = array<i64: 64, 256>}, {transform_indices = @transform_2, window_bounds = array<i64: 512, 256>}, {transform_indices = @transform_3, window_bounds = array<i64: 1, 256>}, {transform_indices = @transform_4, window_bounds = array<i64: 1, 256>}, {transform_indices = @transform_5, window_bounds = array<i64: 64, 256>}]} {
    %c0 = arith.constant 0 : index
    %c0_0 = arith.constant 0 : index
    %0 = vector.load %arg1[%c0, %c0_0] : memref<64x512xbf16, #tpu.memory_space<vmem>>, vector<64x512xbf16>
    %c0_1 = arith.constant 0 : index
    %c0_2 = arith.constant 0 : index
    %1 = vector.load %arg3[%c0_1, %c0_2] : memref<512x256xbf16, #tpu.memory_space<vmem>>, vector<512x256xbf16>
    %cst = arith.constant dense<0.000000e+00> : vector<64x256xf32>
    %2 = tpu.matmul %0, %1, %cst {dimension_numbers = #tpu.dot_dimension_numbers<[1], [0], [0], [1], [0, 0, 1, 1], [], []>} : vector<64x512xbf16>, vector<512x256xbf16>, vector<64x256xf32> -> vector<64x256xf32>
    %cst_3 = arith.constant dense<0.000000e+00> : vector<256xf32>
    %3 = vector.multi_reduction <add>, %2, %cst_3 [0] : vector<64x256xf32> to vector<256xf32>
    %4 = vector.shape_cast %3 : vector<256xf32> to vector<1x256xf32>
    %5 = arith.mulf %2, %2 : vector<64x256xf32>
    %cst_4 = arith.constant dense<0.000000e+00> : vector<256xf32>
    %6 = vector.multi_reduction <add>, %5, %cst_4 [0] : vector<64x256xf32> to vector<256xf32>
    %7 = vector.shape_cast %6 : vector<256xf32> to vector<1x256xf32>
    %cst_5 = arith.constant 1.562500e-02 : f32
    %8 = vector.broadcast %cst_5 : f32 to vector<1x256xf32>
    %9 = arith.mulf %4, %8 : vector<1x256xf32>
    %cst_6 = arith.constant 1.562500e-02 : f32
    %10 = vector.broadcast %cst_6 : f32 to vector<1x256xf32>
    %11 = arith.mulf %7, %10 : vector<1x256xf32>
    %12 = arith.mulf %9, %9 : vector<1x256xf32>
    %13 = arith.subf %11, %12 : vector<1x256xf32>
    %cst_7 = arith.constant 0.000000e+00 : f32
    %14 = vector.broadcast %cst_7 : f32 to vector<1x256xf32>
    %15 = arith.maximumf %13, %14 : vector<1x256xf32>
    %c0_8 = arith.constant 0 : index
    %c0_9 = arith.constant 0 : index
    %16 = vector.load %arg4[%c0_8, %c0_9] : memref<1x256xf32, #tpu.memory_space<vmem>>, vector<1x256xf32>
    %cst_10 = arith.constant 9.99999974E-6 : f32
    %17 = vector.broadcast %cst_10 : f32 to vector<1x256xf32>
    %18 = arith.addf %15, %17 : vector<1x256xf32>
    %19 = math.rsqrt %18 : vector<1x256xf32>
    %20 = arith.mulf %16, %19 : vector<1x256xf32>
    %c0_11 = arith.constant 0 : index
    %c0_12 = arith.constant 0 : index
    %21 = vector.load %arg5[%c0_11, %c0_12] : memref<1x256xf32, #tpu.memory_space<vmem>>, vector<1x256xf32>
    %22 = arith.mulf %9, %20 : vector<1x256xf32>
    %23 = arith.subf %21, %22 : vector<1x256xf32>
    %24 = vector.broadcast %20 : vector<1x256xf32> to vector<64x256xf32>
    %25 = arith.mulf %2, %24 : vector<64x256xf32>
    %26 = vector.broadcast %23 : vector<1x256xf32> to vector<64x256xf32>
    %27 = arith.addf %25, %26 : vector<64x256xf32>
    %cst_13 = arith.constant 5.000000e-01 : f32
    %28 = vector.broadcast %cst_13 : f32 to vector<64x256xf32>
    %29 = arith.mulf %28, %27 : vector<64x256xf32>
    %30 = math.tanh %29 : vector<64x256xf32>
    %cst_14 = arith.constant 5.000000e-01 : f32
    %31 = vector.broadcast %cst_14 : f32 to vector<64x256xf32>
    %32 = arith.mulf %31, %30 : vector<64x256xf32>
    %cst_15 = arith.constant 5.000000e-01 : f32
    %33 = vector.broadcast %cst_15 : f32 to vector<64x256xf32>
    %34 = arith.addf %32, %33 : vector<64x256xf32>
    %c0_16 = arith.constant 0 : index
    %c0_17 = arith.constant 0 : index
    %35 = vector.load %arg2[%c0_16, %c0_17] : memref<64x256xf32, #tpu.memory_space<vmem>>, vector<64x256xf32>
    %36 = arith.mulf %35, %34 : vector<64x256xf32>
    %c0_18 = arith.constant 0 : index
    %c0_19 = arith.constant 0 : index
    %37 = vector.load %arg6[%c0_18, %c0_19] : memref<64x256xf32, #tpu.memory_space<vmem>>, vector<64x256xf32>
    tpu.vector_store %arg6[%c0_18, %c0_19], %36 {strides = array<i32>} : memref<64x256xf32, #tpu.memory_space<vmem>>, vector<64x256xf32>,
    return
  }
  func.func @transform_0(%arg0: i32) -> (i32, i32) {
    %c0_i32 = arith.constant 0 : i32
    %c0_i32_0 = arith.constant 0 : i32
    %c0_i32_1 = arith.constant 0 : i32
    return %c0_i32, %c0_i32_0 : i32, i32
  }
  func.func @transform_1(%arg0: i32) -> (i32, i32) {
    %c0_i32 = arith.constant 0 : i32
    %c0_i32_0 = arith.constant 0 : i32
    return %c0_i32, %arg0 : i32, i32
  }
  func.func @transform_2(%arg0: i32) -> (i32, i32) {
    %c0_i32 = arith.constant 0 : i32
    %c0_i32_0 = arith.constant 0 : i32
    return %c0_i32, %arg0 : i32, i32
  }
  func.func @transform_3(%arg0: i32) -> (i32, i32) {
    %c0_i32 = arith.constant 0 : i32
    %c0_i32_0 = arith.constant 0 : i32
    return %c0_i32, %arg0 : i32, i32
  }
  func.func @transform_4(%arg0: i32) -> (i32, i32) {
    %c0_i32 = arith.constant 0 : i32
    %c0_i32_0 = arith.constant 0 : i32
    return %c0_i32, %arg0 : i32, i32
  }
  func.func @transform_5(%arg0: i32) -> (i32, i32) {
    %c0_i32 = arith.constant 0 : i32
    %c0_i32_0 = arith.constant 0 : i32
    return %c0_i32, %arg0 : i32, i32
  }
}

</mosaic_0001>

<bundles_post_ra>
// kernel: tpu_custom_call.1
= control target key start
LH: loop header
LB: loop body
LE: loop exit
PB: predicated region body
PF: predicated region fallthrough
CT: control target
= control target key end

     0   :  { %s2454_s0 = inlined_call_operand.hbm [shape: bf16[64,512], index: 0, kind: input, shape index: {}]   ;;  %s2455_s1 = inlined_call_operand.hbm [shape: f32[64,512], index: 1, kind: input, shape index: {}]   ;;  %s2456_s2 = inlined_call_operand.hbm [shape: bf16[512,512], index: 2, kind: input, shape index: {}]   ;;  %s2457_s3 = inlined_call_operand.vmem [shape: f32[1,512], index: 3, kind: input, shape index: {}]   ;;  %s2458_s4 = inlined_call_operand.hbm [shape: f32[1,512], index: 4, kind: input, shape index: {}]   ;;  %s2459_s5 = inlined_call_operand.hbm [shape: f32[64,512], index: 5, kind: output, shape index: {}]  }
   0x1   :  { %2469 = sst [smem:[#allocation17_spill]] %s2454_s0 }
   0x2   :  { %2470 = sst [smem:[#allocation18_spill]] %s2455_s1 }
   0x3   :  { %10 = vsyncpa [#allocation3], 0 }
   0x4   :  { %11 = vsyncpa [#allocation6], 0 }
   0x5   :  { %13 = vsyncpa [#allocation6 + $0x1], 0 }
   0x6   :  { %14 = vsyncpa [#allocation9], 0 }
   0x7   :  { %16 = vsyncpa [#allocation9 + $0x1], 0 }
   0x8   :  { %17 = vsyncpa [#allocation4], 0 }
   0x9   :  { %19 = vsyncpa [#allocation4 + $0x1], 0  ;;  %s1992_s18 = smov 0   ;;  %s1994_s19 = smov 0  }
   0xa   :  { %s1996_s20 = smov 0   ;;  %s1998_s21 = smov 0  }
   0xb LB: > { %2471 = sst [smem:[#allocation15_spill]] %s1942_s20  ;;  %s2013_s22 = sadd.s32 1, %s1946_s21   ;;  %s1946_s21 = sphi %s1998_s21, %s2495_s21   ;;  %s1942_s20 = sphi %s1996_s20, %s2492_s20   ;;  %s1938_s19 = sphi %s1994_s19, %s2494_s19   ;;  %s1934_s18 = sphi %s1992_s18, %s2493_s18  }
   0xc   : > { %s53_s23 = sadd.s32 1, %s1942_s20  ;;  %s50_s24 = ssub.s32 %s1946_s21, %s2013_s22 }
   0xd   : > { %p2460_p0 = scmp.ne.s32.totalorder %s1942_s20, %s1938_s19  ;;  %p51_p1 = scmp.eq.s32.totalorder %s50_s24, 0 }
   0xe   : > { %p61_p2 = scmp.eq.s32.totalorder %s1946_s21, 0  ;;  %p1563_p5 = scmp.lt.s32.totalorder %s1946_s21, 2 }
   0xf   : > { %s2022_s25 = scalar_select %p51_p1, %s1942_s20, %s53_s23  }
  0x10   : > { %p62_p3 = por %p61_p2, %p2460_p0  ;;  %s207_s26 = sand.u32 1, %s1946_s21  }
  0x11   : > { %2472 = sst [smem:[#allocation16_spill]] %s2022_s25  ;;  %s2031_s27 = sand.u32 1, %s1942_s20  }
  0x12   : > { %s1427_s28 = sshll.u32 %s2031_s27, 7  ;;  %s1528_s29 = sshll.u32 %s1946_s21, 8 }
  0x13   : > { %s2473_s1 = sld [smem:[#allocation18_spill]]  ;;  %s211_s8 = scalar_lea.vmem [#allocation5], %s1427_s28 }
  0x14   : > { %s218_s9 = sshll.u32 %s211_s8, 4  ;;  %p2040_p6 = pnand %p1563_p5, %p62_p3  ;;  %s2044_s9 = int_to_ptr.vmem [resolvable:$true] %s218_s9 }
  0x15   : > { %s2046_s11 = scalar_lea.sflag [#allocation6], %s207_s26 }
  0x16   : > { %p2052_p8 = pneg %p2040_p6 }
  0x19   : > { %s2038_s7 = scalar_lea.hbm %s2473_s1, %s1528_s29  ;;  %s1769_s16 = scalar_lea.hbm %s2473_s1, 4096 }
  0x1a   : > { %s1764_s12 = scalar_lea.hbm %s2038_s7, 2048  ;;  %p1770_p11 = scmp.lt.s32.totalorder %s2038_s7, %s2473_s1 }
  0x1b   : > { %p1765_p7 = scmp.ne.s32.totalorder %s2038_s7, %s1764_s12  ;;  %p1771_p12 = scmp.lt.s32.totalorder %s1769_s16, %s1764_s12 }
  0x1d   : > { %p1767_p9 = pnand %p2052_p8, %p1765_p7  ;;  %p1772_p13 = por %p1771_p12, %p1770_p11 }
  0x1f   : > { %p1768_p10 = pneg %p1767_p9 }
  0x21   : > { %p1773_p1 = pnand %p1772_p13, %p1768_p10 }
  0x23   : > { %1776 = shalt.err (!%p1773_p1)
}
  0x24   : > { %s1777_s24 = scalar_lea.vmem %s2044_s9, 2048  ;;  %s1948_s26 = smov [#allocation5]  }
  0x25   : > { %p1778_p2 = scmp.ne.s32.totalorder %s2044_s9, %s1777_s24  ;;  %s1782_s28 = sshll.u32 %s1948_s26, 4  ;;  %s1783_s28 = int_to_ptr.vmem [resolvable:$false] %s1782_s28 }
  0x26   : > { %s1784_s29 = scalar_lea.vmem %s1783_s28, 4096  ;;  %p1785_p7 = scmp.lt.s32.totalorder %s2044_s9, %s1783_s28 }
  0x27   : > { %p1780_p3 = pnand %p1778_p2, %p2052_p8  ;;  %p1786_p9 = scmp.lt.s32.totalorder %s1784_s29, %s1777_s24 }
  0x29   : > { %p1781_p5 = pneg %p1780_p3  ;;  %p1787_p4 = por %p1786_p9, %p1785_p7 }
  0x2b   : > { %p1788_p0 = pnand %p1787_p4, %p1781_p5 }
  0x2d   : > { %1791 = shalt.err (!%p1788_p0)
}
  0x2e   : > { %s1949_s30 = smov 512   ;;  %s2461_s6 = smov 256  }
  0x2f   : > { %s2463_s8 = smov 16   ;;  %s2078_s12 = sadd.s32 4294967295, %s1946_s21  }
  0x30   : > { %1551 = dma.hbm_to_vmem [thread:$0]  (!%p2040_p6), %s2038_s7, 2048, %s2044_s9, %s2046_s11, %s1949_s30, %s2461_s6, %s2463_s8  }
  0x31   : > { %s1423_s14 = sadd.s32 4294967294, %s1946_s21   ;;  %p66_p0 = scmp.ne.s32.totalorder %s1938_s19, %s1934_s18 }
  0x32   : > { %p2467_p4 = scmp.eq.s32.totalorder %s2078_s12, 0  ;;  %p168_p10 = scmp.eq.s32.totalorder %s2078_s12, 1 }
  0x33   : > { %p174_p11 = scmp.eq.s32.totalorder %s1423_s14, 1  ;;  %p1424_p12 = scmp.ge.s32.totalorder %s1946_s21, 1 }
  0x34   : > { %p2088_p13 = por %p2467_p4, %p66_p0  ;;  %p2477_p1 = scmp.ne.s32.totalorder %s1942_s20, %s1938_s19 }
  0x35   : > { %p2099_p3 = por %p174_p11, %p66_p0  ;;  %p181_p5 = scmp.lt.s32.totalorder %s1946_s21, 3 }
  0x36   : > { %s2476_s15 = scalar_select %p2088_p13, 1, 0 }
  0x37   : > { %p2095_p2 = por %p168_p10, %p2477_p1  ;;  %p2104_p7 = pnand %p1424_p12, %p181_p5 }
  0x38   : > { %s2479_s9 = scalar_select %p2099_p3, 1, 0 }
  0x39   : > { %s2478_s7 = scalar_select %p2095_p2, 1, 0 }
  0x3a   : > { %s2480_s16 = scalar_select %p2104_p7, 1, 0 }
  0x3b   : > { %s1952_s17 = smov [#allocation2]   ;;  %s1430_s24 = sshll.u32 %s2031_s27, 9 }
  0x3c   : > { %s193_s23 = sshll.u32 %s1952_s17, 4  ;;  %p1544_p9 = pneg %p2104_p7  ;;  %s194_s23 = int_to_ptr.vmem [resolvable:$true] %s193_s23 }
  0x3d   : > { %s1529_s26 = sshll.u32 %s1946_s21, 7  ;;  %s232_s28 = scalar_lea.vmem [#allocation7], %s1430_s24 }
  0x3e   : > { %s239_s29 = sshll.u32 %s232_s28, 4  ;;  %p1545_p0 = pnand %p1544_p9, %p2467_p4  ;;  %s2119_s29 = int_to_ptr.vmem [resolvable:$true] %s239_s29 }
  0x3f   : > { %s2117_s6 = scalar_lea.hbm %s2456_s2, %s1529_s26  ;;  %s1803_s8 = scalar_lea.vmem %s194_s23, 2048 }
  0x40   : > { %p1794_p10 = pneg %p1545_p0  ;;  %p1804_p11 = scmp.ne.s32.totalorder %s194_s23, %s1803_s8 }
  0x41   : > { %p1811_p5 = scmp.lt.s32.totalorder %s194_s23, %s194_s23  ;;  %p1812_p3 = scmp.lt.s32.totalorder %s1803_s8, %s1803_s8 }
  0x42   : > { %p1806_p12 = pnand %p1804_p11, %p1794_p10 }
  0x43   : > { %p1813_p2 = por %p1812_p3, %p1811_p5 }
  0x44   : > { %p1807_p1 = pneg %p1806_p12 }
  0x46   : > { %p1814_p13 = pnand %p1813_p2, %p1807_p1 }
  0x48   : > { %1817 = shalt.err (!%p1814_p13)
}
  0x49   : > { %s2481_s17 = smov 16   ;;  %s2482_s24 = smov 256  }
  0x4a   : > { %s2483_s0 = sld [smem:[#allocation17_spill]]  ;;  %s1818_s26 = scalar_lea.hbm %s2117_s6, 8192 }
  0x4b   : > { %p1819_p9 = scmp.ne.s32.totalorder %s2117_s6, %s1818_s26  ;;  %s1823_s14 = scalar_lea.hbm %s2456_s2, 16384 }
  0x4c   : > { %p1824_p13 = scmp.lt.s32.totalorder %s2117_s6, %s2456_s2  ;;  %p1825_p2 = scmp.lt.s32.totalorder %s1823_s14, %s1818_s26 }
  0x4d   : > { %p1821_p10 = pnand %p1819_p9, %p2052_p8 }
  0x4e   : > { %p1826_p3 = por %p1825_p2, %p1824_p13 }
  0x4f   : > { %p1822_p11 = pneg %p1821_p10 }
  0x50   : > { %1547 = dma.hbm_to_vmem [thread:$0]  (!%p1545_p0), %s2483_s0, 2048, %s194_s23, [#allocation3], %s2482_s24, %s2482_s24, %s2481_s17  }
  0x51   : > { %p1827_p12 = pnand %p1826_p3, %p1822_p11 }
  0x53   : > { %1830 = shalt.err (!%p1827_p12)
}
  0x54   : > { %s1831_s1 = scalar_lea.vmem %s2119_s29, 8192  ;;  %s1953_s23 = smov [#allocation7]  }
  0x55   : > { %p1832_p0 = scmp.ne.s32.totalorder %s2119_s29, %s1831_s1  ;;  %s1836_s17 = sshll.u32 %s1953_s23, 4  ;;  %s1837_s17 = int_to_ptr.vmem [resolvable:$false] %s1836_s17 }
  0x56   : > { %s1838_s28 = scalar_lea.vmem %s1837_s17, 16384  ;;  %p1839_p9 = scmp.lt.s32.totalorder %s2119_s29, %s1837_s17 }
  0x57   : > { %p1834_p1 = pnand %p1832_p0, %p2052_p8  ;;  %p1840_p10 = scmp.lt.s32.totalorder %s1838_s28, %s1831_s1 }
  0x59   : > { %p1835_p5 = pneg %p1834_p1  ;;  %p1841_p4 = por %p1840_p10, %p1839_p9 }
  0x5b   : > { %p1842_p7 = pnand %p1841_p4, %p1835_p5 }
  0x5d   : > { %1845 = shalt.err (!%p1842_p7)
}
  0x5e   : > { %s1954_s20 = smov 128   ;;  %s1955_s25 = smov 8  }
  0x5f   : > { %1554 = dma.hbm_to_vmem [thread:$0]  (!%p2040_p6), %s2117_s6, 8192, %s2119_s29, %s2046_s11, %s2482_s24, %s1954_s20, %s1955_s25  }
  0x60   : > { %s1433_s26 = sshll.u32 %s2031_s27, 1  ;;  %s1530_s8 = sshll.u32 %s1946_s21, 5 }
  0x61   : > { %s2154_s1 = scalar_lea.hbm %s2458_s4, %s1530_s8  ;;  %s261_s23 = scalar_lea.vmem [#allocation8], %s1433_s26 }
  0x62   : > { %s269_s17 = sshll.u32 %s261_s23, 4  ;;  %s258_s28 = scalar_lea.sflag [#allocation9], %s2031_s27  ;;  %s270_s17 = int_to_ptr.vmem [resolvable:$true] %s269_s17 }
  0x63   : > { %s1846_s0 = scalar_lea.hbm %s2154_s1, 32  ;;  %s1851_s29 = scalar_lea.hbm %s2458_s4, 64 }
  0x64   : > { %p1847_p4 = scmp.ne.s32.totalorder %s2154_s1, %s1846_s0  ;;  %p1852_p13 = scmp.lt.s32.totalorder %s2154_s1, %s2458_s4 }
  0x65   : > { %p1853_p2 = scmp.lt.s32.totalorder %s1851_s29, %s1846_s0 }
  0x66   : > { %p1849_p7 = pnand %p1847_p4, %p2052_p8 }
  0x67   : > { %p1854_p3 = por %p1853_p2, %p1852_p13 }
  0x68   : > { %p1850_p11 = pneg %p1849_p7 }
  0x6a   : > { %p1855_p12 = pnand %p1854_p3, %p1850_p11 }
  0x6c   : > { %1858 = shalt.err (!%p1855_p12)
}
  0x6d   : > { %s1859_s25 = scalar_lea.vmem %s270_s17, 32  ;;  %s1956_s27 = smov [#allocation8]  }
  0x6e   : > { %p1860_p0 = scmp.ne.s32.totalorder %s270_s17, %s1859_s25  ;;  %s1864_s26 = sshll.u32 %s1956_s27, 4  ;;  %s1865_s26 = int_to_ptr.vmem [resolvable:$false] %s1864_s26 }
  0x6f   : > { %s1866_s8 = scalar_lea.vmem %s1865_s26, 64  ;;  %p1867_p9 = scmp.lt.s32.totalorder %s270_s17, %s1865_s26 }
  0x70   : > { %p1862_p1 = pnand %p1860_p0, %p2052_p8  ;;  %p1868_p10 = scmp.lt.s32.totalorder %s1866_s8, %s1859_s25 }
  0x72   : > { %p1863_p5 = pneg %p1862_p1  ;;  %p1869_p4 = por %p1868_p10, %p1867_p9 }
  0x74   : > { %p1870_p7 = pnand %p1869_p4, %p1863_p5 }
  0x76   : > { %1873 = shalt.err (!%p1870_p7)
}
  0x77   : > { %1557 = dma.hbm_to_vmem [thread:$0]  (!%p2040_p6), %s2154_s1, 32, %s270_s17, %s258_s28  }
  0x78   : > { %p2484_p11 = scmp.ne.s32.totalorder %s2480_s16, 0 }
  0x79   : > { %p2485_p13 = scmp.eq.s32.totalorder (!%p2484_p11), %s2078_s12, 0 }
  0x7a   : > { %278 = sbr.rel (%p2484_p11) target bundleno = 542 (0x21e), region = 40 }
  0x7f   : > { %1917 = dma.done.wait (%p2485_p13), [#allocation3], 2048   ;;  %p2486_p8 = pmov %p2485_p13 }
  0x80   : > { %s284_s0 = sand.u32 1, %s2078_s12   ;;  %s2181_s13 = sand.u32 1, %s1938_s19  }
  0x81   : > { %1919 = vsyncadd (%p2486_p8), [#allocation3], 4294965248  ;;  %s1438_s10 = sshll.u32 %s2181_s13, 7  ;;  %s285_s30 = scalar_lea.sflag [#allocation6], %s284_s0 }
  0x82   : > { %s2186_s14 = scalar_lea.vmem [#allocation5], %s1438_s10  ;;  %p2487_p6 = scmp.ne.s32.totalorder %s2476_s15, 0 }
  0x84   : > { %1921 = dma.done.wait (%p2487_p6), %s285_s30, 10240  }
  0x85   : > { %1923 = vsyncadd (%p2487_p6), %s285_s30, 4294957056  ;;  %s1439_s16 = sshll.u32 %s2181_s13, 9  ;;  %s1440_s1 = sshll.u32 %s2181_s13, 1 }
  0x86   : > { %s2194_s23 = scalar_lea.vmem [#allocation7], %s1439_s16  ;;  %s303_s17 = scalar_lea.sflag [#allocation9], %s2181_s13 }
  0x87   : > { %s2197_s28 = scalar_lea.vmem [#allocation8], %s1440_s1 }
  0x88   : > { %1925 = dma.done.wait (%p2487_p6), %s303_s17, 32  }
  0x89   : > { %1927 = vsyncadd (%p2487_p6), %s303_s17, 4294967264  ;;  %v1608_v0 = vld [vmem:[%s2194_s23 + $0x74] ss:$8 sps:$4 sm:$0xff]   ;;  %v1612_v2 = vld [vmem:[%s2194_s23 + $0x70] ss:$8 sps:$4 sm:$0xff]   ;;  %s1442_s15 = sshll.u32 %s2078_s12, 1 }
  0x8a   : > { %v1610_v1 = vld [vmem:[%s2194_s23 + $0x174] ss:$8 sps:$4 sm:$0xff]   ;;  %836 = vmatprep.subr.bf16.mxu0 %v1608_v0  ;;  %v1613_v3 = vld [vmem:[%s2194_s23 + $0x170] ss:$8 sps:$4 sm:$0xff]   ;;  %v1614_v4 = vld [vmem:[%s2194_s23 + $0x64] ss:$8 sps:$4 sm:$0xff]  }
  0x8b   : > { %909 = vmatprep.subr.bf16.mxu1 %v1610_v1  ;;  %837 = vmatpush1.bf16.msra.mxu0 %v1612_v2  ;;  %v1616_v5 = vld [vmem:[%s2194_s23 + $0x164] ss:$8 sps:$4 sm:$0xff]   ;;  %v1618_v6 = vld [vmem:[%s2194_s23 + $0x60] ss:$8 sps:$4 sm:$0xff]   ;;  %v1620_v8 = vld [vmem:[%s2194_s23 + $0x54] ss:$8 sps:$4 sm:$0xff]  }
  0x8c   : > { %910 = vmatpush1.bf16.msra.mxu1 %v1613_v3  ;;  %838 = vmatprep.subr.bf16.mxu0 %v1614_v4  ;;  %v1619_v7 = vld [vmem:[%s2194_s23 + $0x160] ss:$8 sps:$4 sm:$0xff]   ;;  %v1622_v9 = vld [vmem:[%s2194_s23 + $0x154] ss:$8 sps:$4 sm:$0xff]   ;;  %v1624_v10 = vld [vmem:[%s2194_s23 + $0x50] ss:$8 sps:$4 sm:$0xff]  }
  0x8d   : > { %911 = vmatprep.subr.bf16.mxu1 %v1616_v5  ;;  %v1625_v11 = vld [vmem:[%s2194_s23 + $0x150] ss:$8 sps:$4 sm:$0xff]   ;;  %v1626_v12 = vld [vmem:[%s2194_s23 + $0x44] ss:$8 sps:$4 sm:$0xff]   ;;  %v1630_v14 = vld [vmem:[%s2194_s23 + $0x40] ss:$8 sps:$4 sm:$0xff]  }
  0x8e   : > { %v1628_v13 = vld [vmem:[%s2194_s23 + $0x144] ss:$8 sps:$4 sm:$0xff]   ;;  %v1631_v15 = vld [vmem:[%s2194_s23 + $0x140] ss:$8 sps:$4 sm:$0xff]   ;;  %v1632_v16 = vld [vmem:[%s2194_s23 + $0x34] ss:$8 sps:$4 sm:$0xff]  }
  0x8f   : > { %839 = vmatpush1.bf16.msra.mxu0 %v1618_v6  ;;  %v1634_v17 = vld [vmem:[%s2194_s23 + $0x134] ss:$8 sps:$4 sm:$0xff]   ;;  %v1636_v18 = vld [vmem:[%s2194_s23 + $0x30] ss:$8 sps:$4 sm:$0xff]   ;;  %v1638_v20 = vld [vmem:[%s2194_s23 + $0x24] ss:$8 sps:$4 sm:$0xff]  }
  0x90   : > { %912 = vmatpush1.bf16.msra.mxu1 %v1619_v7  ;;  %840 = vmatprep.subr.bf16.mxu0 %v1620_v8  ;;  %v1637_v19 = vld [vmem:[%s2194_s23 + $0x130] ss:$8 sps:$4 sm:$0xff]   ;;  %v1640_v21 = vld [vmem:[%s2194_s23 + $0x124] ss:$8 sps:$4 sm:$0xff]   ;;  %v1642_v22 = vld [vmem:[%s2194_s23 + $0x20] ss:$8 sps:$4 sm:$0xff]  }
  0x91   : > { %913 = vmatprep.subr.bf16.mxu1 %v1622_v9  ;;  %v1643_v23 = vld [vmem:[%s2194_s23 + $0x120] ss:$8 sps:$4 sm:$0xff]   ;;  %v1644_v24 = vld [vmem:[%s2194_s23 + $0x14] ss:$8 sps:$4 sm:$0xff]   ;;  %v1648_v26 = vld [vmem:[%s2194_s23 + $0x10] ss:$8 sps:$4 sm:$0xff]  }
  0x92   : > { %v1646_v25 = vld [vmem:[%s2194_s23 + $0x114] ss:$8 sps:$4 sm:$0xff]   ;;  %v1649_v27 = vld [vmem:[%s2194_s23 + $0x110] ss:$8 sps:$4 sm:$0xff]   ;;  %v1650_v28 = vld [vmem:[%s2194_s23 + $0x4] ss:$8 sps:$4 sm:$0xff]  }
  0x93   : > { %841 = vmatpush1.bf16.msra.mxu0 %v1624_v10  ;;  %v1652_v29 = vld [vmem:[%s2194_s23 + $0x104] ss:$8 sps:$4 sm:$0xff]   ;;  %v1654_v30 = vld [vmem:[%s2194_s23] ss:$8 sps:$4 sm:$0xff]   ;;  %v1656_v32 = vld [vmem:[%s2194_s23 + $0xf4] ss:$8 sps:$4 sm:$0xff]  }
  0x94   : > { %914 = vmatpush1.bf16.msra.mxu1 %v1625_v11  ;;  %842 = vmatprep.subr.bf16.mxu0 %v1626_v12  ;;  %v1655_v31 = vld [vmem:[%s2194_s23 + $0x100] ss:$8 sps:$4 sm:$0xff]   ;;  %v1658_v33 = vld [vmem:[%s2194_s23 + $0x1f4] ss:$8 sps:$4 sm:$0xff]   ;;  %v1660_v34 = vld [vmem:[%s2194_s23 + $0xf0] ss:$8 sps:$4 sm:$0xff]  }
  0x95   : > { %915 = vmatprep.subr.bf16.mxu1 %v1628_v13  ;;  %v1661_v35 = vld [vmem:[%s2194_s23 + $0x1f0] ss:$8 sps:$4 sm:$0xff]   ;;  %v1662_v36 = vld [vmem:[%s2194_s23 + $0xe4] ss:$8 sps:$4 sm:$0xff]   ;;  %v1666_v38 = vld [vmem:[%s2194_s23 + $0xe0] ss:$8 sps:$4 sm:$0xff]  }
  0x96   : > { %v1664_v37 = vld [vmem:[%s2194_s23 + $0x1e4] ss:$8 sps:$4 sm:$0xff]   ;;  %v1667_v39 = vld [vmem:[%s2194_s23 + $0x1e0] ss:$8 sps:$4 sm:$0xff]   ;;  %v1668_v40 = vld [vmem:[%s2194_s23 + $0xd4] ss:$8 sps:$4 sm:$0xff]  }
  0x97   : > { %843 = vmatpush1.bf16.msra.mxu0 %v1630_v14  ;;  %v1670_v41 = vld [vmem:[%s2194_s23 + $0x1d4] ss:$8 sps:$4 sm:$0xff]   ;;  %v1672_v42 = vld [vmem:[%s2194_s23 + $0xd0] ss:$8 sps:$4 sm:$0xff]   ;;  %v1674_v44 = vld [vmem:[%s2194_s23 + $0xc4] ss:$8 sps:$4 sm:$0xff]  }
  0x98   : > { %916 = vmatpush1.bf16.msra.mxu1 %v1631_v15  ;;  %844 = vmatprep.subr.bf16.mxu0 %v1632_v16  ;;  %v1673_v43 = vld [vmem:[%s2194_s23 + $0x1d0] ss:$8 sps:$4 sm:$0xff]   ;;  %v1676_v45 = vld [vmem:[%s2194_s23 + $0x1c4] ss:$8 sps:$4 sm:$0xff]   ;;  %v1678_v46 = vld [vmem:[%s2194_s23 + $0xc0] ss:$8 sps:$4 sm:$0xff]  }
  0x99   : > { %917 = vmatprep.subr.bf16.mxu1 %v1634_v17  ;;  %v1679_v47 = vld [vmem:[%s2194_s23 + $0x1c0] ss:$8 sps:$4 sm:$0xff]   ;;  %v1680_v48 = vld [vmem:[%s2194_s23 + $0xb4] ss:$8 sps:$4 sm:$0xff]   ;;  %v1684_v52 = vld [vmem:[%s2194_s23 + $0xb0] ss:$8 sps:$4 sm:$0xff]  }
  0x9a   : > { %v1706_v49 = vld [vmem:[#allocation2 + $0x4] ss:$16 sps:$4 sm:$0xff]   ;;  %v1709_v51 = vld [vmem:[#allocation2 + $0xc] ss:$16 sps:$4 sm:$0xff]   ;;  %v1685_v53 = vld [vmem:[%s2194_s23 + $0x1b0] ss:$8 sps:$4 sm:$0xff]  }
  0x9b   : > { %845 = vmatpush1.bf16.msra.mxu0 %v1636_v18  ;;  %v1682_v50 = vld [vmem:[%s2194_s23 + $0x1b4] ss:$8 sps:$4 sm:$0xff]   ;;  %868 = vmatprep.mubr.bf16.mxu0 %v1706_v49  ;;  %v1686_v54 = vld [vmem:[%s2194_s23 + $0xa4] ss:$8 sps:$4 sm:$0xff]   ;;  %v1690_v56 = vld [vmem:[%s2194_s23 + $0xa0] ss:$8 sps:$4 sm:$0xff]  }
  0x9c   : > { %918 = vmatpush1.bf16.msra.mxu1 %v1637_v19  ;;  %846 = vmatprep.subr.bf16.mxu0 %v1638_v20  ;;  %v1688_v55 = vld [vmem:[%s2194_s23 + $0x1a4] ss:$8 sps:$4 sm:$0xff]   ;;  %v1691_v57 = vld [vmem:[%s2194_s23 + $0x1a0] ss:$8 sps:$4 sm:$0xff]   ;;  %v1692_v58 = vld [vmem:[%s2194_s23 + $0x94] ss:$8 sps:$4 sm:$0xff]  }
  0x9d   : > { %919 = vmatprep.subr.bf16.mxu1 %v1640_v21  ;;  %941 = vmatprep.mubr.bf16.mxu1 %v1709_v51  ;;  %v1694_v59 = vld [vmem:[%s2194_s23 + $0x194] ss:$8 sps:$4 sm:$0xff]   ;;  %v1696_v60 = vld [vmem:[%s2194_s23 + $0x90] ss:$8 sps:$4 sm:$0xff]   ;;  %v1698_v62 = vld [vmem:[%s2194_s23 + $0x84] ss:$8 sps:$4 sm:$0xff]  }
  0x9e   : > { %v1697_v61 = vld [vmem:[%s2194_s23 + $0x190] ss:$8 sps:$4 sm:$0xff]   ;;  %v1700_v63 = vld [vmem:[%s2194_s23 + $0x184] ss:$8 sps:$4 sm:$0xff]   ;;  %v1702_v0 = vld [vmem:[%s2194_s23 + $0x80] ss:$8 sps:$4 sm:$0xff]  }
  0x9f   : > { %847 = vmatpush1.bf16.msra.mxu0 %v1642_v22  ;;  %v1703_v1 = vld [vmem:[%s2194_s23 + $0x180] ss:$8 sps:$4 sm:$0xff]   ;;  %v1710_v4 = vld [vmem:[#allocation2 + $0x24] ss:$16 sps:$4 sm:$0xff]   ;;  %v1712_v5 = vld [vmem:[#allocation2 + $0x2c] ss:$16 sps:$4 sm:$0xff]  }
  0xa0   : > { %920 = vmatpush1.bf16.msra.mxu1 %v1643_v23  ;;  %848 = vmatprep.subr.bf16.mxu0 %v1644_v24  ;;  %v1704_v2 = vld [vmem:[#allocation2] ss:$16 sps:$4 sm:$0xff]   ;;  %v1707_v3 = vld [vmem:[#allocation2 + $0x8] ss:$16 sps:$4 sm:$0xff]   ;;  %v1716_v8 = vld [vmem:[#allocation2 + $0x44] ss:$16 sps:$4 sm:$0xff]  }
  0xa1   : > { %921 = vmatprep.subr.bf16.mxu1 %v1646_v25  ;;  %v1714_v6 = vld [vmem:[#allocation2 + $0x20] ss:$16 sps:$4 sm:$0xff]   ;;  %v1715_v7 = vld [vmem:[#allocation2 + $0x28] ss:$16 sps:$4 sm:$0xff]   ;;  %v1718_v9 = vld [vmem:[#allocation2 + $0x4c] ss:$16 sps:$4 sm:$0xff]  }
  0xa2   : > { %v1720_v10 = vld [vmem:[#allocation2 + $0x40] ss:$16 sps:$4 sm:$0xff]   ;;  %v1721_v11 = vld [vmem:[#allocation2 + $0x48] ss:$16 sps:$4 sm:$0xff]   ;;  %v1722_v12 = vld [vmem:[#allocation2 + $0x64] ss:$16 sps:$4 sm:$0xff]  }
  0xa3   : > { %849 = vmatpush1.bf16.msra.mxu0 %v1648_v26  ;;  %v1724_v13 = vld [vmem:[#allocation2 + $0x6c] ss:$16 sps:$4 sm:$0xff]   ;;  %v1726_v14 = vld [vmem:[#allocation2 + $0x60] ss:$16 sps:$4 sm:$0xff]   ;;  %v1727_v15 = vld [vmem:[#allocation2 + $0x68] ss:$16 sps:$4 sm:$0xff]  }
  0xa4   : > { %922 = vmatpush1.bf16.msra.mxu1 %v1649_v27  ;;  %850 = vmatprep.subr.bf16.mxu0 %v1650_v28  ;;  %p350_p2 = scmp.lt.s32.totalorder %s1442_s15, 3  ;;  %s2376_s24 = scalar_lea.vmem [#allocation10], %s1438_s10 }
  0xa5   : > { %923 = vmatprep.subr.bf16.mxu1 %v1652_v29  ;;  %s1531_s20 = sshll.u32 %s2078_s12, 8  ;;  %s1286_s25 = sshll.u32 %s2376_s24, 4  ;;  %s2408_s25 = int_to_ptr.vmem [resolvable:$true] %s1286_s25 }
  0xa6   : > { %s2497_s15 = smov (!%p350_p2, %s1442_s15), 3  ;;  %s2405_s26 = scalar_lea.hbm %s2459_s5, %s1531_s20 }
  0xa7   : > { %851 = vmatpush1.bf16.msra.mxu0 %v1654_v30  ;;  %s352_s29 = scalar_lea.vmem %s2457_s3, %s2497_s15  ;;  %s1273_s8 = scalar_lea.sflag [#allocation4], %s2181_s13 }
  0xa8   : > { %924 = vmatpush1.bf16.msra.mxu1 %v1655_v31  ;;  %852 = vmatprep.subr.bf16.mxu0 %v1656_v32  ;;  %s1874_s0 = scalar_lea.vmem %s2408_s25, 2048  ;;  %p2488_p12 = scmp.ne.s32.totalorder %s2478_s7, 0 }
  0xa9   : > { %925 = vmatprep.subr.bf16.mxu1 %v1658_v33  ;;  %p1875_p3 = scmp.ne.s32.totalorder %s2408_s25, %s1874_s0  ;;  %s1958_s10 = smov [#allocation10]  }
  0xaa   : > { %s1878_s30 = sshll.u32 %s1958_s10, 4  ;;  %s1879_s30 = int_to_ptr.vmem [resolvable:$false] %s1878_s30 }
  0xab   : > { %853 = vmatpush2.bf16.msra.mxu0 %v1660_v34  ;;  %p1876_p0 = pnand %p1875_p3, %p2488_p12  ;;  %p1881_p5 = scmp.lt.s32.totalorder %s2408_s25, %s1879_s30 }
  0xac   : > { %926 = vmatpush2.bf16.msra.mxu1 %v1661_v35  ;;  %854 = vmatprep.subr.bf16.mxu0 %v1662_v36 }
  0xad   : > { %927 = vmatprep.subr.bf16.mxu1 %v1664_v37  ;;  %p1877_p1 = pneg %p1876_p0 }
  0xaf   : > { %855 = vmatpush2.bf16.msra.mxu0 %v1666_v38 }
  0xb0   : > { %928 = vmatpush2.bf16.msra.mxu1 %v1667_v39  ;;  %856 = vmatprep.subr.bf16.mxu0 %v1668_v40 }
  0xb1   : > { %929 = vmatprep.subr.bf16.mxu1 %v1670_v41 }
  0xb3   : > { %857 = vmatpush2.bf16.msra.mxu0 %v1672_v42 }
  0xb4   : > { %930 = vmatpush2.bf16.msra.mxu1 %v1673_v43  ;;  %858 = vmatprep.subr.bf16.mxu0 %v1674_v44 }
  0xb5   : > { %931 = vmatprep.subr.bf16.mxu1 %v1676_v45 }
  0xb7   : > { %859 = vmatpush2.bf16.msra.mxu0 %v1678_v46 }
  0xb8   : > { %932 = vmatpush2.bf16.msra.mxu1 %v1679_v47  ;;  %860 = vmatprep.subr.bf16.mxu0 %v1680_v48 }
  0xb9   : > { %933 = vmatprep.subr.bf16.mxu1 %v1682_v50 }
  0xbb   : > { %861 = vmatpush2.bf16.msra.mxu0 %v1684_v52 }
  0xbc   : > { %934 = vmatpush2.bf16.msra.mxu1 %v1685_v53  ;;  %862 = vmatprep.subr.bf16.mxu0 %v1686_v54 }
  0xbd   : > { %935 = vmatprep.subr.bf16.mxu1 %v1688_v55 }
  0xbf   : > { %863 = vmatpush2.bf16.msra.mxu0 %v1690_v56 }
  0xc0   : > { %936 = vmatpush2.bf16.msra.mxu1 %v1691_v57  ;;  %864 = vmatprep.subr.bf16.mxu0 %v1692_v58 }
  0xc1   : > { %937 = vmatprep.subr.bf16.mxu1 %v1694_v59 }
  0xc3   : > { %865 = vmatpush2.bf16.msra.mxu0 %v1696_v60 }
  0xc4   : > { %938 = vmatpush2.bf16.msra.mxu1 %v1697_v61  ;;  %866 = vmatprep.subr.bf16.mxu0 %v1698_v62 }
  0xc5   : > { %939 = vmatprep.subr.bf16.mxu1 %v1700_v63 }
  0xc7   : > { %867 = vmatpush2.bf16.msra.mxu0 %v1702_v0 }
  0xc8   : > { %940 = vmatpush2.bf16.msra.mxu1 %v1703_v1 }
  0xca   : > { %869 = vmatmul.mubr.bf16.vlgmr.msra.gmra.mxu0 %v1704_v2 }
  0xcb   : > { %942 = vmatmul.mubr.bf16.vlgmr.msra.gmra.mxu1 %v1707_v3  ;;  %878 = vmatprep.mubr.bf16.mxu0 %v1710_v4 }
  0xcc   : > { %951 = vmatprep.mubr.bf16.mxu1 %v1712_v5 }
  0xd2   : > { %879 = vmatmul.mubr.bf16.gmra.mxu0 %v1714_v6 }
  0xd3   : > { %952 = vmatmul.mubr.bf16.gmra.mxu1 %v1715_v7  ;;  %888 = vmatprep.mubr.bf16.mxu0 %v1716_v8 }
  0xd4   : > { %961 = vmatprep.mubr.bf16.mxu1 %v1718_v9 }
  0xda   : > { %889 = vmatmul.mubr.bf16.gmra.mxu0 %v1720_v10 }
  0xdb   : > { %962 = vmatmul.mubr.bf16.gmra.mxu1 %v1721_v11  ;;  %898 = vmatprep.mubr.bf16.mxu0 %v1722_v12 }
  0xdc   : > { %971 = vmatprep.mubr.bf16.mxu1 %v1724_v13 }
  0xe2   : > { %899 = vmatmul.mubr.bf16.gmra.mxu0 %v1726_v14 }
  0xe3   : > { %972 = vmatmul.mubr.bf16.gmra.mxu1 %v1727_v15 }
 0x18a   : > { %v870_v16 = vpop.f32.mrf.mxu0 }
 0x18b   : > { %v943_v17 = vpop.f32.mrf.mxu1 }
 0x18c   : > { %v872_v18 = vpop.f32.mrf.mxu0  ;;  %v2269_v31 = vadd.f32 %v943_v17, %v870_v16 }
 0x18d   : > { %v945_v19 = vpop.f32.mrf.mxu1 }
 0x18e   : > { %v874_v20 = vpop.f32.mrf.mxu0  ;;  %v2275_v36 = vadd.f32 %v945_v19, %v872_v18  ;;  %v1008_v42 = vmul.f32 %v2269_v31, %v2269_v31 }
 0x18f   : > { %v947_v21 = vpop.f32.mrf.mxu1 }
 0x190   : > { %v876_v22 = vpop.f32.mrf.mxu0  ;;  %v2267_v28 = vadd.f32 %v947_v21, %v874_v20  ;;  %v1009_v49 = vmul.f32 %v2275_v36, %v2275_v36 }
 0x191   : > { %v949_v23 = vpop.f32.mrf.mxu1 }
 0x192   : > { %v880_v24 = vpop.f32.mrf.mxu0  ;;  %v2271_v32 = vadd.f32 %v949_v23, %v876_v22  ;;  %v1010_v37 = vmul.f32 %v2267_v28, %v2267_v28  ;;  %v982_v50 = vadd.f32 %v2267_v28, %v2269_v31 }
 0x193   : > { %v953_v25 = vpop.f32.mrf.mxu1 }
 0x194   : > { %v882_v26 = vpop.f32.mrf.mxu0  ;;  %v2273_v33 = vadd.f32 %v953_v25, %v880_v24  ;;  %v1011_v43 = vmul.f32 %v2271_v32, %v2271_v32  ;;  %v1024_v51 = vadd.f32 %v1010_v37, %v1008_v42  ;;  %v995_v57 = vadd.f32 %v2271_v32, %v2275_v36 }
 0x195   : > { %v955_v27 = vpop.f32.mrf.mxu1 }
 0x196   : > { %v884_v29 = vpop.f32.mrf.mxu0  ;;  %v2279_v38 = vadd.f32 %v955_v27, %v882_v26  ;;  %v1012_v44 = vmul.f32 %v2273_v33, %v2273_v33  ;;  %v983_v58 = vadd.f32 %v982_v50, %v2273_v33  ;;  %v1037_v60 = vadd.f32 %v1011_v43, %v1009_v49 }
 0x197   : > { %v957_v30 = vpop.f32.mrf.mxu1 }
 0x198   : > { %v886_v34 = vpop.f32.mrf.mxu0  ;;  %v2281_v39 = vadd.f32 %v957_v30, %v884_v29  ;;  %v1013_v52 = vmul.f32 %v2279_v38, %v2279_v38  ;;  %v1025_v61 = vadd.f32 %v1024_v51, %v1012_v44  ;;  %v996_v2 = vadd.f32 %v995_v57, %v2279_v38 }
 0x199   : > { %v959_v35 = vpop.f32.mrf.mxu1 }
 0x19a   : > { %v890_v40 = vpop.f32.mrf.mxu0  ;;  %v2289_v45 = vadd.f32 %v959_v35, %v886_v34  ;;  %v1014_v53 = vmul.f32 %v2281_v39, %v2281_v39  ;;  %v984_v3 = vadd.f32 %v983_v58, %v2281_v39  ;;  %v1038_v5 = vadd.f32 %v1037_v60, %v1013_v52 }
 0x19b   : > { %v963_v41 = vpop.f32.mrf.mxu1 }
 0x19c   : > { %v2291_v46 = vadd.f32 %v963_v41, %v890_v40  ;;  %v892_v47 = vpop.f32.mrf.mxu0  ;;  %v1015_v62 = vmul.f32 %v2289_v45, %v2289_v45  ;;  %v1026_v6 = vadd.f32 %v1025_v61, %v1014_v53  ;;  %v997_v11 = vadd.f32 %v996_v2, %v2289_v45 }
 0x19d   : > { %v965_v48 = vpop.f32.mrf.mxu1 }
 0x19e   : > { %v2301_v54 = vadd.f32 %v965_v48, %v892_v47  ;;  %v894_v55 = vpop.f32.mrf.mxu0  ;;  %v1016_v63 = vmul.f32 %v2291_v46, %v2291_v46  ;;  %v985_v12 = vadd.f32 %v984_v3, %v2291_v46  ;;  %v1039_v14 = vadd.f32 %v1038_v5, %v1015_v62 }
 0x19f   : > { %v967_v56 = vpop.f32.mrf.mxu1 }
 0x1a0   : > { %v2306_v59 = vadd.f32 %v967_v56, %v894_v55  ;;  %v896_v0 = vpop.f32.mrf.mxu0  ;;  %v1017_v7 = vmul.f32 %v2301_v54, %v2301_v54  ;;  %v1027_v15 = vadd.f32 %v1026_v6, %v1016_v63  ;;  %v998_v19 = vadd.f32 %v997_v11, %v2301_v54 }
 0x1a1   : > { %v969_v1 = vpop.f32.mrf.mxu1 }
 0x1a2   : > { %v2314_v4 = vadd.f32 %v969_v1, %v896_v0  ;;  %v1018_v8 = vmul.f32 %v2306_v59, %v2306_v59  ;;  %v900_v9 = vpop.f32.mrf.mxu0  ;;  %v986_v20 = vadd.f32 %v985_v12, %v2306_v59  ;;  %v1040_v23 = vadd.f32 %v1039_v14, %v1017_v7 }
 0x1a3   : > { %v973_v10 = vpop.f32.mrf.mxu1 }
 0x1a4   : > { %v2322_v13 = vadd.f32 %v973_v10, %v900_v9  ;;  %v1019_v16 = vmul.f32 %v2314_v4, %v2314_v4  ;;  %v902_v17 = vpop.f32.mrf.mxu0  ;;  %v1028_v24 = vadd.f32 %v1027_v15, %v1018_v8  ;;  %v999_v27 = vadd.f32 %v998_v19, %v2314_v4 }
 0x1a5   : > { %v975_v18 = vpop.f32.mrf.mxu1 }
 0x1a6   : > { %v1020_v21 = vmul.f32 %v2322_v13, %v2322_v13  ;;  %v2330_v22 = vadd.f32 %v975_v18, %v902_v17  ;;  %v904_v25 = vpop.f32.mrf.mxu0  ;;  %v987_v29 = vadd.f32 %v986_v20, %v2322_v13  ;;  %v1041_v35 = vadd.f32 %v1040_v23, %v1019_v16 }
 0x1a7   : > { %v977_v26 = vpop.f32.mrf.mxu1 }
 0x1a8   : > { %v1021_v30 = vmul.f32 %v2330_v22, %v2330_v22  ;;  %v2336_v34 = vadd.f32 %v977_v26, %v904_v25  ;;  %v1029_v37 = vadd.f32 %v1028_v24, %v1020_v21  ;;  %v906_v40 = vpop.f32.mrf.mxu0  ;;  %v1000_v42 = vadd.f32 %v999_v27, %v2330_v22 }
 0x1a9   : > { %v979_v41 = vpop.f32.mrf.mxu1 }
 0x1aa   : > { %v988_v43 = vadd.f32 %v987_v29, %v2336_v34  ;;  %v1022_v44 = vmul.f32 %v2336_v34, %v2336_v34  ;;  %v2342_v47 = vadd.f32 %v979_v41, %v906_v40  ;;  %v1042_v48 = vadd.f32 %v1041_v35, %v1021_v30 }
 0x1ab   : > { %v1957_v35 = vmov 1966171168   ;;  %v1071_v40 = vlaneseq }
 0x1ac   : > { %v989_v49 = vrot.slane %v988_v43, 4  ;;  %v1030_v50 = vadd.f32 %v1029_v37, %v1022_v44  ;;  %v1001_v51 = vadd.f32 %v1000_v42, %v2342_v47  ;;  %v1023_v52 = vmul.f32 %v2342_v47, %v2342_v47 }
 0x1ad   : > { %v1069_v37 = vunpack.c.l.s4 %v1957_v35  ;;  %v1072_v42 = vshrl.u32 %v1071_v40, 7 }
 0x1ae   : > { %v990_v53 = vadd.f32 %v989_v49, %v988_v43  ;;  %v1031_v55 = vrot.slane %v1030_v50, 4  ;;  %v1002_v56 = vrot.slane %v1001_v51, 4  ;;  %v1043_v57 = vadd.f32 %v1042_v48, %v1023_v52 }
 0x1af   : > { %v1070_v41 = vunpack.c.0.s8 %v1069_v37 }
 0x1b0   : > { %v991_v58 = vrot.slane %v990_v53, 2  ;;  %v1032_v60 = vadd.f32 %v1031_v55, %v1030_v50  ;;  %v1003_v61 = vadd.f32 %v1002_v56, %v1001_v51  ;;  %v1044_v62 = vrot.slane %v1043_v57, 4  ;;  %v1060_v51 = vld [vmem:[%s352_s29] sm:$0x3] }
 0x1b1   : > { %v1073_v44 = vsub.s32 %v1070_v41, %v1072_v42  ;;  %v1092_v55 = vsub.s32 1, %v1072_v42 }
 0x1b2   : > { %v992_v63 = vadd.f32 %v991_v58, %v990_v53  ;;  %v1033_v0 = vrot.slane %v1032_v60, 2  ;;  %v1004_v1 = vrot.slane %v1003_v61, 2  ;;  %v1045_v2 = vadd.f32 %v1044_v62, %v1043_v57 }
 0x1b3   : > { %v1088_v53 = vsub.s32 0, %v1072_v42 }
 0x1b4   : > { %v993_v3 = vrot.slane %v992_v63, 1  ;;  %v1034_v5 = vadd.f32 %v1033_v0, %v1032_v60  ;;  %v1005_v6 = vadd.f32 %v1004_v1, %v1003_v61  ;;  %v1046_v7 = vrot.slane %v1045_v2, 2  ;;  %v1084_v0 = vld [vmem:[%s2197_s28] sm:$0x3] }
 0x1b6   : > { %v994_v8 = vadd.f32 %v993_v3, %v992_v63  ;;  %v1035_v9 = vrot.slane %v1034_v5, 1  ;;  %v1006_v10 = vrot.slane %v1005_v6, 1  ;;  %v1047_v11 = vadd.f32 %v1046_v7, %v1045_v2 }
 0x1b8   : > { %v1036_v12 = vadd.f32 %v1035_v9, %v1034_v5  ;;  %v1050_v14 = vmul.f32 0.015625, %v994_v8  ;;  %v1007_v15 = vadd.f32 %v1006_v10, %v1005_v6  ;;  %v1048_v16 = vrot.slane %v1047_v11, 1 }
 0x1ba   : > { %v1052_v17 = vmul.f32 0.015625, %v1036_v12  ;;  %v1054_v18 = vmul.f32 %v1050_v14, %v1050_v14  ;;  %v1049_v19 = vadd.f32 %v1048_v16, %v1047_v11  ;;  %v1051_v20 = vmul.f32 0.015625, %v1007_v15 }
 0x1bc   : > { %v1056_v21 = vsub.f32 %v1052_v17, %v1054_v18  ;;  %v1053_v23 = vmul.f32 0.015625, %v1049_v19  ;;  %v1055_v24 = vmul.f32 %v1051_v20, %v1051_v20 }
 0x1be   : > { %v1058_v25 = vmax.f32 %v1056_v21, 0.0  ;;  %v1057_v26 = vsub.f32 %v1053_v23, %v1055_v24 }
 0x1c0   : > { %v1061_v27 = vadd.f32 1e-05, %v1058_v25  ;;  %v1059_v29 = vmax.f32 %v1057_v26, 0.0 }
 0x1c2   : > { %v1062_v30 = vadd.f32 1e-05, %v1059_v29  ;;  %1728 = vrsqrt.f32 %v1061_v27 }
 0x1c4   : > { %1730 = vrsqrt.f32 %v1062_v30 }
 0x1cf   : > { %v1729_v43 = vpop.eup %1728 }
 0x1d1   : > { %v1731_v48 = vpop.eup %1730 }
 0x1d2   : > { %v1067_v49 = vcombine.low %v1729_v43, %v1731_v48 }
 0x1d4   : > { %v1074_v50 = vrot.slane %v1067_v49, %v1073_v44 }
 0x1d6   : > { %v1081_v52 = vrot.slane %v1074_v50, %v1073_v44 }
 0x1d8   : > { %v1083_v56 = vmul.f32 %v1081_v52, %v1060_v51 }
 0x1da   : > { %v1089_v57 = vrot.slane %v1083_v56, %v1088_v53  ;;  %v1093_v58 = vrot.slane %v1083_v56, %v1092_v55 }
 0x1dc   : > { %v1096_v60 = vmul.f32 %v1089_v57, %v1050_v14  ;;  %v1097_v61 = vmul.f32 %v1093_v58, %v1051_v20  ;;  %v1117_v3 = vmul.f32 %v1089_v57, %v2269_v31  ;;  %v1118_v7 = vmul.f32 %v1093_v58, %v2275_v36 }
 0x1dd   : > { %v1119_v8 = vmul.f32 %v1089_v57, %v2267_v28  ;;  %v1120_v10 = vmul.f32 %v1093_v58, %v2271_v32  ;;  %v1121_v12 = vmul.f32 %v1089_v57, %v2273_v33  ;;  %v1122_v15 = vmul.f32 %v1093_v58, %v2279_v38 }
 0x1de   : > { %v1100_v62 = vcombine.low %v1096_v60, %v1097_v61  ;;  %v1123_v17 = vmul.f32 %v1089_v57, %v2281_v39  ;;  %v1124_v19 = vmul.f32 %v1093_v58, %v2289_v45  ;;  %v1125_v28 = vmul.f32 %v1089_v57, %v2291_v46 }
 0x1df   : > { %v1126_v32 = vmul.f32 %v1093_v58, %v2301_v54  ;;  %v1127_v25 = vmul.f32 %v1089_v57, %v2306_v59  ;;  %v1128_v39 = vmul.f32 %v1093_v58, %v2314_v4  ;;  %v1129_v45 = vmul.f32 %v1089_v57, %v2322_v13 }
 0x1e0   : > { %v1107_v63 = vrot.slane %v1100_v62, %v1073_v44  ;;  %v1130_v35 = vmul.f32 %v1093_v58, %v2330_v22  ;;  %v1131_v59 = vmul.f32 %v1089_v57, %v2336_v34  ;;  %v1132_v4 = vmul.f32 %v1093_v58, %v2342_v47  ;;  %v1224_v57 = vld [vmem:[%s2186_s14] sm:$0xff]  ;;  %v1225_v62 = vld [vmem:[%s2186_s14 + $0x8] sm:$0xff] }
 0x1e2   : > { %v1114_v1 = vrot.slane %v1107_v63, %v1073_v44 }
 0x1e4   : > { %v1116_v2 = vsub.f32 %v1084_v0, %v1114_v1 }
 0x1e6   : > { %v1137_v5 = vrot.slane %v1116_v2, %v1088_v53  ;;  %v1141_v6 = vrot.slane %v1116_v2, %v1092_v55  ;;  %v1226_v2 = vld [vmem:[%s2186_s14 + $0x10] sm:$0xff] }
 0x1e8   : > { %v1144_v9 = vadd.f32 %v1137_v5, %v1117_v3  ;;  %v1145_v11 = vadd.f32 %v1141_v6, %v1118_v7  ;;  %v1146_v14 = vadd.f32 %v1137_v5, %v1119_v8  ;;  %v1147_v16 = vadd.f32 %v1141_v6, %v1120_v10  ;;  %v1227_v7 = vld [vmem:[%s2186_s14 + $0x18] sm:$0xff] }
 0x1e9   : > { %v1148_v18 = vadd.f32 %v1137_v5, %v1121_v12  ;;  %v1149_v20 = vadd.f32 %v1141_v6, %v1122_v15  ;;  %v1150_v21 = vadd.f32 %v1137_v5, %v1123_v17  ;;  %v1151_v24 = vadd.f32 %v1141_v6, %v1124_v19  ;;  %v1228_v12 = vld [vmem:[%s2186_s14 + $0x20] sm:$0xff] }
 0x1ea   : > { %v1160_v31 = vmul.f32 0.5, %v1144_v9  ;;  %v1161_v36 = vmul.f32 0.5, %v1145_v11  ;;  %v1162_v23 = vmul.f32 0.5, %v1146_v14  ;;  %v1163_v33 = vmul.f32 0.5, %v1147_v16 }
 0x1eb   : > { %v1152_v38 = vadd.f32 %v1137_v5, %v1125_v28  ;;  %v1164_v26 = vmul.f32 0.5, %v1148_v18  ;;  %v1153_v27 = vadd.f32 %v1141_v6, %v1126_v32  ;;  %v1165_v29 = vmul.f32 0.5, %v1149_v20  ;;  %v1229_v18 = vld [vmem:[%s2186_s14 + $0x28] sm:$0xff]  ;;  %v1230_v28 = vld [vmem:[%s2186_s14 + $0x30] sm:$0xff] }
 0x1ec   : > { %1732 = vtanh.f32 %v1160_v31  ;;  %v1154_v30 = vadd.f32 %v1137_v5, %v1127_v25  ;;  %v1166_v46 = vmul.f32 0.5, %v1150_v21  ;;  %v1155_v54 = vadd.f32 %v1141_v6, %v1128_v39 }
 0x1ed   : > { %1734 = vtanh.f32 %v1161_v36  ;;  %v1167_v37 = vmul.f32 0.5, %v1151_v24  ;;  %v1156_v40 = vadd.f32 %v1137_v5, %v1129_v45  ;;  %v1168_v41 = vmul.f32 0.5, %v1152_v38 }
 0x1ee   : > { %1736 = vtanh.f32 %v1162_v23  ;;  %v1157_v42 = vadd.f32 %v1141_v6, %v1130_v35  ;;  %v1169_v43 = vmul.f32 0.5, %v1153_v27  ;;  %v1158_v44 = vadd.f32 %v1137_v5, %v1131_v59  ;;  %v1232_v27 = vld [vmem:[%s2186_s14 + $0x40] sm:$0xff]  ;;  %v1233_v35 = vld [vmem:[%s2186_s14 + $0x48] sm:$0xff] }
 0x1ef   : > { %1738 = vtanh.f32 %v1163_v33  ;;  %v1170_v13 = vmul.f32 0.5, %v1154_v30  ;;  %v1159_v48 = vadd.f32 %v1141_v6, %v1132_v4  ;;  %v1171_v49 = vmul.f32 0.5, %v1155_v54  ;;  %v1231_v33 = vld [vmem:[%s2186_s14 + $0x38] sm:$0xff] }
 0x1f0   : > { %1740 = vtanh.f32 %v1164_v26  ;;  %v1172_v22 = vmul.f32 0.5, %v1156_v40  ;;  %v1173_v50 = vmul.f32 0.5, %v1157_v42  ;;  %v1174_v34 = vmul.f32 0.5, %v1158_v44 }
 0x1f1   : > { %1742 = vtanh.f32 %v1165_v29  ;;  %v1175_v51 = vmul.f32 0.5, %v1159_v48 }
 0x1f2   : > { %1744 = vtanh.f32 %v1166_v46 }
 0x1f3   : > { %1746 = vtanh.f32 %v1167_v37 }
 0x1f4   : > { %1748 = vtanh.f32 %v1168_v41  ;;  %v1234_v41 = vld [vmem:[%s2186_s14 + $0x50] sm:$0xff] }
 0x1f5   : > { %1750 = vtanh.f32 %v1169_v43 }
 0x1f6   : > { %1752 = vtanh.f32 %v1170_v13  ;;  %v1235_v13 = vld [vmem:[%s2186_s14 + $0x58] sm:$0xff] }
 0x1f7   : > { %1754 = vtanh.f32 %v1171_v49 }
 0x1f8   : > { %1756 = vtanh.f32 %v1172_v22 }
 0x1f9   : > { %v1733_v47 = vpop.eup %1732  ;;  %1758 = vtanh.f32 %v1173_v50 }
 0x1fa   : > { %v1735_v52 = vpop.eup %1734  ;;  %1760 = vtanh.f32 %v1174_v34  ;;  %v1192_v53 = vmul.f32 0.5, %v1733_v47  ;;  %v1236_v34 = vld [vmem:[%s2186_s14 + $0x60] sm:$0xff] }
 0x1fb   : > { %v1737_v55 = vpop.eup %1736  ;;  %1762 = vtanh.f32 %v1175_v51  ;;  %v1193_v56 = vmul.f32 0.5, %v1735_v52 }
 0x1fc   : > { %v1739_v58 = vpop.eup %1738  ;;  %v1194_v60 = vmul.f32 0.5, %v1737_v55  ;;  %v1208_v61 = vadd.f32 0.5, %v1192_v53  ;;  %v1237_v55 = vld [vmem:[%s2186_s14 + $0x68] sm:$0xff] }
 0x1fd   : > { %v1741_v63 = vpop.eup %1740  ;;  %v1195_v0 = vmul.f32 0.5, %v1739_v58  ;;  %v1209_v1 = vadd.f32 0.5, %v1193_v56 }
 0x1fe   : > { %v1743_v3 = vpop.eup %1742  ;;  %v1196_v5 = vmul.f32 0.5, %v1741_v63  ;;  %v1210_v6 = vadd.f32 0.5, %v1194_v60  ;;  %v1240_v8 = vmul.f32 %v1224_v57, %v1208_v61  ;;  %v1238_v60 = vld [vmem:[%s2186_s14 + $0x70] sm:$0xff]  ;;  %v1239_v63 = vld [vmem:[%s2186_s14 + $0x78] sm:$0xff]  ;;  %s1880_s14 = scalar_lea.vmem %s1879_s30, 4096 }
 0x1ff   : > { %v1745_v9 = vpop.eup %1744  ;;  %v1197_v10 = vmul.f32 0.5, %v1743_v3  ;;  %v1211_v11 = vadd.f32 0.5, %v1195_v0  ;;  %v1241_v14 = vmul.f32 %v1225_v62, %v1209_v1  ;;  %p1882_p9 = scmp.lt.s32.totalorder %s1880_s14, %s1874_s0 }
 0x200   : > { %v1747_v15 = vpop.eup %1746  ;;  %v1198_v16 = vmul.f32 0.5, %v1745_v9  ;;  %v1212_v17 = vadd.f32 0.5, %v1196_v5  ;;  %v1242_v31 = vmul.f32 %v1226_v2, %v1210_v6  ;;  %1256 = vst [vmem:[%s2376_s24] sm:$0xff] %v1240_v8 }
 0x201   : > { %v1749_v19 = vpop.eup %1748  ;;  %v1199_v20 = vmul.f32 0.5, %v1747_v15  ;;  %v1213_v36 = vadd.f32 0.5, %v1197_v10  ;;  %v1243_v21 = vmul.f32 %v1227_v7, %v1211_v11  ;;  %1257 = vst [vmem:[%s2376_s24 + $0x8] sm:$0xff] %v1241_v14  ;;  %p1883_p10 = por %p1882_p9, %p1881_p5 }
 0x202   : > { %v1751_v23 = vpop.eup %1750  ;;  %v1200_v32 = vmul.f32 0.5, %v1749_v19  ;;  %v1214_v24 = vadd.f32 0.5, %v1198_v16  ;;  %v1244_v25 = vmul.f32 %v1228_v12, %v1212_v17  ;;  %1258 = vst [vmem:[%s2376_s24 + $0x10] sm:$0xff] %v1242_v31 }
 0x203   : > { %v1753_v38 = vpop.eup %1752  ;;  %v1201_v26 = vmul.f32 0.5, %v1751_v23  ;;  %v1215_v39 = vadd.f32 0.5, %v1199_v20  ;;  %v1245_v29 = vmul.f32 %v1229_v18, %v1213_v36  ;;  %1259 = vst [vmem:[%s2376_s24 + $0x18] sm:$0xff] %v1243_v21  ;;  %p1884_p4 = pnand %p1883_p10, %p1877_p1 }
 0x204   : > { %v1755_v45 = vpop.eup %1754  ;;  %v1202_v30 = vmul.f32 0.5, %v1753_v38  ;;  %v1216_v46 = vadd.f32 0.5, %v1200_v32  ;;  %v1246_v54 = vmul.f32 %v1230_v28, %v1214_v24  ;;  %1260 = vst [vmem:[%s2376_s24 + $0x20] sm:$0xff] %v1244_v25 }
 0x205   : > { %v1757_v37 = vpop.eup %1756  ;;  %v1203_v59 = vmul.f32 0.5, %v1755_v45  ;;  %v1217_v40 = vadd.f32 0.5, %v1201_v26  ;;  %v1247_v4 = vmul.f32 %v1231_v33, %v1215_v39  ;;  %1261 = vst [vmem:[%s2376_s24 + $0x28] sm:$0xff] %v1245_v29 }
 0x206   : > { %v1759_v42 = vpop.eup %1758  ;;  %v1204_v43 = vmul.f32 0.5, %v1757_v37  ;;  %v1218_v44 = vadd.f32 0.5, %v1202_v30  ;;  %v1248_v48 = vmul.f32 %v1232_v27, %v1216_v46  ;;  %1262 = vst [vmem:[%s2376_s24 + $0x30] sm:$0xff] %v1246_v54 }
 0x207   : > { %v1761_v49 = vpop.eup %1760  ;;  %v1205_v22 = vmul.f32 0.5, %v1759_v42  ;;  %v1219_v50 = vadd.f32 0.5, %v1203_v59  ;;  %v1249_v51 = vmul.f32 %v1233_v35, %v1217_v40  ;;  %1263 = vst [vmem:[%s2376_s24 + $0x38] sm:$0xff] %v1247_v4 }
 0x208   : > { %v1763_v47 = vpop.eup %1762  ;;  %v1206_v52 = vmul.f32 0.5, %v1761_v49  ;;  %v1220_v53 = vadd.f32 0.5, %v1204_v43  ;;  %v1250_v56 = vmul.f32 %v1234_v41, %v1218_v44  ;;  %1264 = vst [vmem:[%s2376_s24 + $0x40] sm:$0xff] %v1248_v48 }
 0x209   : > { %v1207_v57 = vmul.f32 0.5, %v1763_v47  ;;  %v1221_v58 = vadd.f32 0.5, %v1205_v22  ;;  %v1251_v61 = vmul.f32 %v1235_v13, %v1219_v50  ;;  %1265 = vst [vmem:[%s2376_s24 + $0x48] sm:$0xff] %v1249_v51 }
 0x20a   : > { %v1222_v62 = vadd.f32 0.5, %v1206_v52  ;;  %v1252_v0 = vmul.f32 %v1236_v34, %v1220_v53  ;;  %1266 = vst [vmem:[%s2376_s24 + $0x50] sm:$0xff] %v1250_v56 }
 0x20b   : > { %v1223_v1 = vadd.f32 0.5, %v1207_v57  ;;  %v1253_v2 = vmul.f32 %v1237_v55, %v1221_v58  ;;  %1267 = vst [vmem:[%s2376_s24 + $0x58] sm:$0xff] %v1251_v61 }
 0x20c   : > { %v1254_v3 = vmul.f32 %v1238_v60, %v1222_v62  ;;  %1268 = vst [vmem:[%s2376_s24 + $0x60] sm:$0xff] %v1252_v0 }
 0x20d   : > { %v1255_v5 = vmul.f32 %v1239_v63, %v1223_v1  ;;  %1269 = vst [vmem:[%s2376_s24 + $0x68] sm:$0xff] %v1253_v2 }
 0x20e   : > { %1270 = vst [vmem:[%s2376_s24 + $0x70] sm:$0xff] %v1254_v3 }
 0x20f   : > { %1271 = vst [vmem:[%s2376_s24 + $0x78] sm:$0xff] %v1255_v5 }
 0x210   : > { %1887 = shalt.err (!%p1884_p4)
}
 0x211   : > { %s1888_s16 = scalar_lea.hbm %s2405_s26, 2048  ;;  %s1892_s17 = scalar_lea.hbm %s2459_s5, 4096 }
 0x212   : > { %p1889_p7 = scmp.ne.s32.totalorder %s2405_s26, %s1888_s16  ;;  %p1893_p8 = scmp.lt.s32.totalorder %s2405_s26, %s2459_s5 }
 0x213   : > { %p1894_p6 = scmp.lt.s32.totalorder %s1892_s17, %s1888_s16 }
 0x214   : > { %p1890_p11 = pnand %p1889_p7, %p2488_p12 }
 0x215   : > { %p1895_p2 = por %p1894_p6, %p1893_p8 }
 0x216   : > { %p1891_p13 = pneg %p1890_p11 }
 0x218   : > { %p1896_p3 = pnand %p1895_p2, %p1891_p13 }
 0x21a   : > { %1899 = shalt.err (!%p1896_p3)
}
 0x21b   : > { %s1959_s11 = smov 256   ;;  %s1960_s6 = smov 512  }
 0x21c   : > { %s1961_s29 = smov 16  }
 0x21d   : > { %1542 = dma.vmem_to_hbm [thread:$0]  (%p2488_p12), %s2408_s25, 2048, %s2405_s26, %s1273_s8, %s1959_s11, %s1960_s6, %s1961_s29  }
 0x21e PF: > { %s1301_s24 = sand.u32 1, %s1934_s18   ;;  %p2489_p0 = scmp.ne.s32.totalorder %s2479_s9, 0 }
 0x21f   : > { %p2490_p1 = scmp.ge.s32.totalorder %s1946_s21, 2  ;;  %s1302_s20 = scalar_lea.sflag [#allocation4], %s1301_s24 }
 0x221   : > { %p1559_p5 = pnand %p2490_p1, %p2489_p0 }
 0x223   : > { %p1560_p9 = pneg %p1559_p5 }
 0x225   : > { %1929 = dma.done.wait (%p1560_p9), %s1302_s20, 2048  }
 0x226   : > { %1931 = vsyncadd (%p1560_p9), %s1302_s20, 4294965248  ;;  %s2491_s12 = sld [smem:[#allocation15_spill]]  ;;  %p22_p10 = scmp.ge.s32.totalorder %s2013_s22, 4  }
 0x227   : > { %s2492_s20 = sld [smem:[#allocation16_spill]]  ;;  %s2493_s18 = smov %s1938_s19 }
 0x228   : > { %s2495_s21 = smov %s2013_s22  ;;  %24 = sbr.rel (!%p22_p10) target bundleno = 11 (0xb), region = 117 }
 0x22c   : > { %s2494_s19 = smov %s2491_s12 }
 0x22d   :  { %1307 = vsyncpa [#allocation3], 1 }
 0x22e   :  { %1309 = vsyncpa [#allocation3 + $0x1], 1 }
 0x22f   :  { %1310 = vsyncpa [#allocation6], 1 }
 0x230   :  { %1312 = vsyncpa [#allocation6 + $0x1], 1 }
 0x231   :  { %1313 = vsyncpa [#allocation9], 1 }
 0x232   :  { %1315 = vsyncpa [#allocation9 + $0x1], 1 }
 0x233   :  { %1316 = vsyncpa [#allocation4], 1 }
 0x234   :  { %1318 = vsyncpa [#allocation4 + $0x1], 1 }

// kernel: tpu_custom_call.1
= control target key start
LH: loop header
LB: loop body
LE: loop exit
PB: predicated region body
PF: predicated region fallthrough
CT: control target
= control target key end

     0   :  { %s2454_s0 = inlined_call_operand.hbm [shape: bf16[64,512], index: 0, kind: input, shape index: {}]   ;;  %s2455_s1 = inlined_call_operand.hbm [shape: f32[64,512], index: 1, kind: input, shape index: {}]   ;;  %s2456_s2 = inlined_call_operand.hbm [shape: bf16[512,512], index: 2, kind: input, shape index: {}]   ;;  %s2457_s3 = inlined_call_operand.vmem [shape: f32[1,512], index: 3, kind: input, shape index: {}]   ;;  %s2458_s4 = inlined_call_operand.hbm [shape: f32[1,512], index: 4, kind: input, shape index: {}]   ;;  %s2459_s5 = inlined_call_operand.hbm [shape: f32[64,512], index: 5, kind: output, shape index: {}]  }
   0x1   :  { %2469 = sst [smem:[#allocation17_spill]] %s2454_s0 }
   0x2   :  { %2470 = sst [smem:[#allocation18_spill]] %s2455_s1 }
   0x3   :  { %10 = vsyncpa [#allocation3], 0 }
   0x4   :  { %11 = vsyncpa [#allocation6], 0 }
   0x5   :  { %13 = vsyncpa [#allocation6 + $0x1], 0 }
   0x6   :  { %14 = vsyncpa [#allocation9], 0 }
   0x7   :  { %16 = vsyncpa [#allocation9 + $0x1], 0 }
   0x8   :  { %17 = vsyncpa [#allocation4], 0 }
   0x9   :  { %19 = vsyncpa [#allocation4 + $0x1], 0  ;;  %s1992_s18 = smov 0   ;;  %s1994_s19 = smov 0  }
   0xa   :  { %s1996_s20 = smov 0   ;;  %s1998_s21 = smov 0  }
   0xb LB: > { %2471 = sst [smem:[#allocation15_spill]] %s1942_s20  ;;  %s2013_s22 = sadd.s32 1, %s1946_s21   ;;  %s1946_s21 = sphi %s1998_s21, %s2495_s21   ;;  %s1942_s20 = sphi %s1996_s20, %s2492_s20   ;;  %s1938_s19 = sphi %s1994_s19, %s2494_s19   ;;  %s1934_s18 = sphi %s1992_s18, %s2493_s18  }
   0xc   : > { %s53_s23 = sadd.s32 1, %s1942_s20  ;;  %s50_s24 = ssub.s32 %s1946_s21, %s2013_s22 }
   0xd   : > { %p2460_p0 = scmp.ne.s32.totalorder %s1942_s20, %s1938_s19  ;;  %p51_p1 = scmp.eq.s32.totalorder %s50_s24, 0 }
   0xe   : > { %p61_p2 = scmp.eq.s32.totalorder %s1946_s21, 0  ;;  %p1563_p5 = scmp.lt.s32.totalorder %s1946_s21, 2 }
   0xf   : > { %s2022_s25 = scalar_select %p51_p1, %s1942_s20, %s53_s23  }
  0x10   : > { %p62_p3 = por %p61_p2, %p2460_p0  ;;  %s207_s26 = sand.u32 1, %s1946_s21  }
  0x11   : > { %2472 = sst [smem:[#allocation16_spill]] %s2022_s25  ;;  %s2031_s27 = sand.u32 1, %s1942_s20  }
  0x12   : > { %s1427_s28 = sshll.u32 %s2031_s27, 7  ;;  %s1528_s29 = sshll.u32 %s1946_s21, 8 }
  0x13   : > { %s2473_s1 = sld [smem:[#allocation18_spill]]  ;;  %s211_s8 = scalar_lea.vmem [#allocation5], %s1427_s28 }
  0x14   : > { %s218_s9 = sshll.u32 %s211_s8, 4  ;;  %p2040_p6 = pnand %p1563_p5, %p62_p3  ;;  %s2044_s9 = int_to_ptr.vmem [resolvable:$true] %s218_s9 }
  0x15   : > { %s2046_s11 = scalar_lea.sflag [#allocation6], %s207_s26 }
  0x16   : > { %p2052_p8 = pneg %p2040_p6 }
  0x19   : > { %s2038_s7 = scalar_lea.hbm %s2473_s1, %s1528_s29  ;;  %s1769_s16 = scalar_lea.hbm %s2473_s1, 4096 }
  0x1a   : > { %s1764_s12 = scalar_lea.hbm %s2038_s7, 2048  ;;  %p1770_p11 = scmp.lt.s32.totalorder %s2038_s7, %s2473_s1 }
  0x1b   : > { %p1765_p7 = scmp.ne.s32.totalorder %s2038_s7, %s1764_s12  ;;  %p1771_p12 = scmp.lt.s32.totalorder %s1769_s16, %s1764_s12 }
  0x1d   : > { %p1767_p9 = pnand %p2052_p8, %p1765_p7  ;;  %p1772_p13 = por %p1771_p12, %p1770_p11 }
  0x1f   : > { %p1768_p10 = pneg %p1767_p9 }
  0x21   : > { %p1773_p1 = pnand %p1772_p13, %p1768_p10 }
  0x23   : > { %1776 = shalt.err (!%p1773_p1)
}
  0x24   : > { %s1777_s24 = scalar_lea.vmem %s2044_s9, 2048  ;;  %s1948_s26 = smov [#allocation5]  }
  0x25   : > { %p1778_p2 = scmp.ne.s32.totalorder %s2044_s9, %s1777_s24  ;;  %s1782_s28 = sshll.u32 %s1948_s26, 4  ;;  %s1783_s28 = int_to_ptr.vmem [resolvable:$false] %s1782_s28 }
  0x26   : > { %s1784_s29 = scalar_lea.vmem %s1783_s28, 4096  ;;  %p1785_p7 = scmp.lt.s32.totalorder %s2044_s9, %s1783_s28 }
  0x27   : > { %p1780_p3 = pnand %p1778_p2, %p2052_p8  ;;  %p1786_p9 = scmp.lt.s32.totalorder %s1784_s29, %s1777_s24 }
  0x29   : > { %p1781_p5 = pneg %p1780_p3  ;;  %p1787_p4 = por %p1786_p9, %p1785_p7 }
  0x2b   : > { %p1788_p0 = pnand %p1787_p4, %p1781_p5 }
  0x2d   : > { %1791 = shalt.err (!%p1788_p0)
}
  0x2e   : > { %s1949_s30 = smov 512   ;;  %s2461_s6 = smov 256  }
  0x2f   : > { %s2463_s8 = smov 16   ;;  %s2078_s12 = sadd.s32 4294967295, %s1946_s21  }
  0x30   : > { %1551 = dma.hbm_to_vmem [thread:$0]  (!%p2040_p6), %s2038_s7, 2048, %s2044_s9, %s2046_s11, %s1949_s30, %s2461_s6, %s2463_s8  }
  0x31   : > { %s1423_s14 = sadd.s32 4294967294, %s1946_s21   ;;  %p66_p0 = scmp.ne.s32.totalorder %s1938_s19, %s1934_s18 }
  0x32   : > { %p2467_p4 = scmp.eq.s32.totalorder %s2078_s12, 0  ;;  %p168_p10 = scmp.eq.s32.totalorder %s2078_s12, 1 }
  0x33   : > { %p174_p11 = scmp.eq.s32.totalorder %s1423_s14, 1  ;;  %p1424_p12 = scmp.ge.s32.totalorder %s1946_s21, 1 }
  0x34   : > { %p2088_p13 = por %p2467_p4, %p66_p0  ;;  %p2477_p1 = scmp.ne.s32.totalorder %s1942_s20, %s1938_s19 }
  0x35   : > { %p2099_p3 = por %p174_p11, %p66_p0  ;;  %p181_p5 = scmp.lt.s32.totalorder %s1946_s21, 3 }
  0x36   : > { %s2476_s15 = scalar_select %p2088_p13, 1, 0 }
  0x37   : > { %p2095_p2 = por %p168_p10, %p2477_p1  ;;  %p2104_p7 = pnand %p1424_p12, %p181_p5 }
  0x38   : > { %s2479_s9 = scalar_select %p2099_p3, 1, 0 }
  0x39   : > { %s2478_s7 = scalar_select %p2095_p2, 1, 0 }
  0x3a   : > { %s2480_s16 = scalar_select %p2104_p7, 1, 0 }
  0x3b   : > { %s1952_s17 = smov [#allocation2]   ;;  %s1430_s24 = sshll.u32 %s2031_s27, 9 }
  0x3c   : > { %s193_s23 = sshll.u32 %s1952_s17, 4  ;;  %p1544_p9 = pneg %p2104_p7  ;;  %s194_s23 = int_to_ptr.vmem [resolvable:$true] %s193_s23 }
  0x3d   : > { %s1529_s26 = sshll.u32 %s1946_s21, 7  ;;  %s232_s28 = scalar_lea.vmem [#allocation7], %s1430_s24 }
  0x3e   : > { %s239_s29 = sshll.u32 %s232_s28, 4  ;;  %p1545_p0 = pnand %p1544_p9, %p2467_p4  ;;  %s2119_s29 = int_to_ptr.vmem [resolvable:$true] %s239_s29 }
  0x3f   : > { %s2117_s6 = scalar_lea.hbm %s2456_s2, %s1529_s26  ;;  %s1803_s8 = scalar_lea.vmem %s194_s23, 2048 }
  0x40   : > { %p1794_p10 = pneg %p1545_p0  ;;  %p1804_p11 = scmp.ne.s32.totalorder %s194_s23, %s1803_s8 }
  0x41   : > { %p1811_p5 = scmp.lt.s32.totalorder %s194_s23, %s194_s23  ;;  %p1812_p3 = scmp.lt.s32.totalorder %s1803_s8, %s1803_s8 }
  0x42   : > { %p1806_p12 = pnand %p1804_p11, %p1794_p10 }
  0x43   : > { %p1813_p2 = por %p1812_p3, %p1811_p5 }
  0x44   : > { %p1807_p1 = pneg %p1806_p12 }
  0x46   : > { %p1814_p13 = pnand %p1813_p2, %p1807_p1 }
  0x48   : > { %1817 = shalt.err (!%p1814_p13)
}
  0x49   : > { %s2481_s17 = smov 16   ;;  %s2482_s24 = smov 256  }
  0x4a   : > { %s2483_s0 = sld [smem:[#allocation17_spill]]  ;;  %s1818_s26 = scalar_lea.hbm %s2117_s6, 8192 }
  0x4b   : > { %p1819_p9 = scmp.ne.s32.totalorder %s2117_s6, %s1818_s26  ;;  %s1823_s14 = scalar_lea.hbm %s2456_s2, 16384 }
  0x4c   : > { %p1824_p13 = scmp.lt.s32.totalorder %s2117_s6, %s2456_s2  ;;  %p1825_p2 = scmp.lt.s32.totalorder %s1823_s14, %s1818_s26 }
  0x4d   : > { %p1821_p10 = pnand %p1819_p9, %p2052_p8 }
  0x4e   : > { %p1826_p3 = por %p1825_p2, %p1824_p13 }
  0x4f   : > { %p1822_p11 = pneg %p1821_p10 }
  0x50   : > { %1547 = dma.hbm_to_vmem [thread:$0]  (!%p1545_p0), %s2483_s0, 2048, %s194_s23, [#allocation3], %s2482_s24, %s2482_s24, %s2481_s17  }
  0x51   : > { %p1827_p12 = pnand %p1826_p3, %p1822_p11 }
  0x53   : > { %1830 = shalt.err (!%p1827_p12)
}
  0x54   : > { %s1831_s1 = scalar_lea.vmem %s2119_s29, 8192  ;;  %s1953_s23 = smov [#allocation7]  }
  0x55   : > { %p1832_p0 = scmp.ne.s32.totalorder %s2119_s29, %s1831_s1  ;;  %s1836_s17 = sshll.u32 %s1953_s23, 4  ;;  %s1837_s17 = int_to_ptr.vmem [resolvable:$false] %s1836_s17 }
  0x56   : > { %s1838_s28 = scalar_lea.vmem %s1837_s17, 16384  ;;  %p1839_p9 = scmp.lt.s32.totalorder %s2119_s29, %s1837_s17 }
  0x57   : > { %p1834_p1 = pnand %p1832_p0, %p2052_p8  ;;  %p1840_p10 = scmp.lt.s32.totalorder %s1838_s28, %s1831_s1 }
  0x59   : > { %p1835_p5 = pneg %p1834_p1  ;;  %p1841_p4 = por %p1840_p10, %p1839_p9 }
  0x5b   : > { %p1842_p7 = pnand %p1841_p4, %p1835_p5 }
  0x5d   : > { %1845 = shalt.err (!%p1842_p7)
}
  0x5e   : > { %s1954_s20 = smov 128   ;;  %s1955_s25 = smov 8  }
  0x5f   : > { %1554 = dma.hbm_to_vmem [thread:$0]  (!%p2040_p6), %s2117_s6, 8192, %s2119_s29, %s2046_s11, %s2482_s24, %s1954_s20, %s1955_s25  }
  0x60   : > { %s1433_s26 = sshll.u32 %s2031_s27, 1  ;;  %s1530_s8 = sshll.u32 %s1946_s21, 5 }
  0x61   : > { %s2154_s1 = scalar_lea.hbm %s2458_s4, %s1530_s8  ;;  %s261_s23 = scalar_lea.vmem [#allocation8], %s1433_s26 }
  0x62   : > { %s269_s17 = sshll.u32 %s261_s23, 4  ;;  %s258_s28 = scalar_lea.sflag [#allocation9], %s2031_s27  ;;  %s270_s17 = int_to_ptr.vmem [resolvable:$true] %s269_s17 }
  0x63   : > { %s1846_s0 = scalar_lea.hbm %s2154_s1, 32  ;;  %s1851_s29 = scalar_lea.hbm %s2458_s4, 64 }
  0x64   : > { %p1847_p4 = scmp.ne.s32.totalorder %s2154_s1, %s1846_s0  ;;  %p1852_p13 = scmp.lt.s32.totalorder %s2154_s1, %s2458_s4 }
  0x65   : > { %p1853_p2 = scmp.lt.s32.totalorder %s1851_s29, %s1846_s0 }
  0x66   : > { %p1849_p7 = pnand %p1847_p4, %p2052_p8 }
  0x67   : > { %p1854_p3 = por %p1853_p2, %p1852_p13 }
  0x68   : > { %p1850_p11 = pneg %p1849_p7 }
  0x6a   : > { %p1855_p12 = pnand %p1854_p3, %p1850_p11 }
  0x6c   : > { %1858 = shalt.err (!%p1855_p12)
}
  0x6d   : > { %s1859_s25 = scalar_lea.vmem %s270_s17, 32  ;;  %s1956_s27 = smov [#allocation8]  }
  0x6e   : > { %p1860_p0 = scmp.ne.s32.totalorder %s270_s17, %s1859_s25  ;;  %s1864_s26 = sshll.u32 %s1956_s27, 4  ;;  %s1865_s26 = int_to_ptr.vmem [resolvable:$false] %s1864_s26 }
  0x6f   : > { %s1866_s8 = scalar_lea.vmem %s1865_s26, 64  ;;  %p1867_p9 = scmp.lt.s32.totalorder %s270_s17, %s1865_s26 }
  0x70   : > { %p1862_p1 = pnand %p1860_p0, %p2052_p8  ;;  %p1868_p10 = scmp.lt.s32.totalorder %s1866_s8, %s1859_s25 }
  0x72   : > { %p1863_p5 = pneg %p1862_p1  ;;  %p1869_p4 = por %p1868_p10, %p1867_p9 }
  0x74   : > { %p1870_p7 = pnand %p1869_p4, %p1863_p5 }
  0x76   : > { %1873 = shalt.err (!%p1870_p7)
}
  0x77   : > { %1557 = dma.hbm_to_vmem [thread:$0]  (!%p2040_p6), %s2154_s1, 32, %s270_s17, %s258_s28  }
  0x78   : > { %p2484_p11 = scmp.ne.s32.totalorder %s2480_s16, 0 }
  0x79   : > { %p2485_p13 = scmp.eq.s32.totalorder (!%p2484_p11), %s2078_s12, 0 }
  0x7a   : > { %278 = sbr.rel (%p2484_p11) target bundleno = 542 (0x21e), region = 40 }
  0x7f   : > { %1917 = dma.done.wait (%p2485_p13), [#allocation3], 2048   ;;  %p2486_p8 = pmov %p2485_p13 }
  0x80   : > { %s284_s0 = sand.u32 1, %s2078_s12   ;;  %s2181_s13 = sand.u32 1, %s1938_s19  }
  0x81   : > { %1919 = vsyncadd (%p2486_p8), [#allocation3], 4294965248  ;;  %s1438_s10 = sshll.u32 %s2181_s13, 7  ;;  %s285_s30 = scalar_lea.sflag [#allocation6], %s284_s0 }
  0x82   : > { %s2186_s14 = scalar_lea.vmem [#allocation5], %s1438_s10  ;;  %p2487_p6 = scmp.ne.s32.totalorder %s2476_s15, 0 }
  0x84   : > { %1921 = dma.done.wait (%p2487_p6), %s285_s30, 10240  }
  0x85   : > { %1923 = vsyncadd (%p2487_p6), %s285_s30, 4294957056  ;;  %s1439_s16 = sshll.u32 %s2181_s13, 9  ;;  %s1440_s1 = sshll.u32 %s2181_s13, 1 }
  0x86   : > { %s2194_s23 = scalar_lea.vmem [#allocation7], %s1439_s16  ;;  %s303_s17 = scalar_lea.sflag [#allocation9], %s2181_s13 }
  0x87   : > { %s2197_s28 = scalar_lea.vmem [#allocation8], %s1440_s1 }
  0x88   : > { %1925 = dma.done.wait (%p2487_p6), %s303_s17, 32  }
  0x89   : > { %1927 = vsyncadd (%p2487_p6), %s303_s17, 4294967264  ;;  %v1608_v0 = vld [vmem:[%s2194_s23 + $0x74] ss:$8 sps:$4 sm:$0xff]   ;;  %v1612_v2 = vld [vmem:[%s2194_s23 + $0x70] ss:$8 sps:$4 sm:$0xff]   ;;  %s1442_s15 = sshll.u32 %s2078_s12, 1 }
  0x8a   : > { %v1610_v1 = vld [vmem:[%s2194_s23 + $0x174] ss:$8 sps:$4 sm:$0xff]   ;;  %836 = vmatprep.subr.bf16.mxu0 %v1608_v0  ;;  %v1613_v3 = vld [vmem:[%s2194_s23 + $0x170] ss:$8 sps:$4 sm:$0xff]   ;;  %v1614_v4 = vld [vmem:[%s2194_s23 + $0x64] ss:$8 sps:$4 sm:$0xff]  }
  0x8b   : > { %909 = vmatprep.subr.bf16.mxu1 %v1610_v1  ;;  %837 = vmatpush1.bf16.msra.mxu0 %v1612_v2  ;;  %v1616_v5 = vld [vmem:[%s2194_s23 + $0x164] ss:$8 sps:$4 sm:$0xff]   ;;  %v1618_v6 = vld [vmem:[%s2194_s23 + $0x60] ss:$8 sps:$4 sm:$0xff]   ;;  %v1620_v8 = vld [vmem:[%s2194_s23 + $0x54] ss:$8 sps:$4 sm:$0xff]  }
  0x8c   : > { %910 = vmatpush1.bf16.msra.mxu1 %v1613_v3  ;;  %838 = vmatprep.subr.bf16.mxu0 %v1614_v4  ;;  %v1619_v7 = vld [vmem:[%s2194_s23 + $0x160] ss:$8 sps:$4 sm:$0xff]   ;;  %v1622_v9 = vld [vmem:[%s2194_s23 + $0x154] ss:$8 sps:$4 sm:$0xff]   ;;  %v1624_v10 = vld [vmem:[%s2194_s23 + $0x50] ss:$8 sps:$4 sm:$0xff]  }
  0x8d   : > { %911 = vmatprep.subr.bf16.mxu1 %v1616_v5  ;;  %v1625_v11 = vld [vmem:[%s2194_s23 + $0x150] ss:$8 sps:$4 sm:$0xff]   ;;  %v1626_v12 = vld [vmem:[%s2194_s23 + $0x44] ss:$8 sps:$4 sm:$0xff]   ;;  %v1630_v14 = vld [vmem:[%s2194_s23 + $0x40] ss:$8 sps:$4 sm:$0xff]  }
  0x8e   : > { %v1628_v13 = vld [vmem:[%s2194_s23 + $0x144] ss:$8 sps:$4 sm:$0xff]   ;;  %v1631_v15 = vld [vmem:[%s2194_s23 + $0x140] ss:$8 sps:$4 sm:$0xff]   ;;  %v1632_v16 = vld [vmem:[%s2194_s23 + $0x34] ss:$8 sps:$4 sm:$0xff]  }
  0x8f   : > { %839 = vmatpush1.bf16.msra.mxu0 %v1618_v6  ;;  %v1634_v17 = vld [vmem:[%s2194_s23 + $0x134] ss:$8 sps:$4 sm:$0xff]   ;;  %v1636_v18 = vld [vmem:[%s2194_s23 + $0x30] ss:$8 sps:$4 sm:$0xff]   ;;  %v1638_v20 = vld [vmem:[%s2194_s23 + $0x24] ss:$8 sps:$4 sm:$0xff]  }
  0x90   : > { %912 = vmatpush1.bf16.msra.mxu1 %v1619_v7  ;;  %840 = vmatprep.subr.bf16.mxu0 %v1620_v8  ;;  %v1637_v19 = vld [vmem:[%s2194_s23 + $0x130] ss:$8 sps:$4 sm:$0xff]   ;;  %v1640_v21 = vld [vmem:[%s2194_s23 + $0x124] ss:$8 sps:$4 sm:$0xff]   ;;  %v1642_v22 = vld [vmem:[%s2194_s23 + $0x20] ss:$8 sps:$4 sm:$0xff]  }
  0x91   : > { %913 = vmatprep.subr.bf16.mxu1 %v1622_v9  ;;  %v1643_v23 = vld [vmem:[%s2194_s23 + $0x120] ss:$8 sps:$4 sm:$0xff]   ;;  %v1644_v24 = vld [vmem:[%s2194_s23 + $0x14] ss:$8 sps:$4 sm:$0xff]   ;;  %v1648_v26 = vld [vmem:[%s2194_s23 + $0x10] ss:$8 sps:$4 sm:$0xff]  }
  0x92   : > { %v1646_v25 = vld [vmem:[%s2194_s23 + $0x114] ss:$8 sps:$4 sm:$0xff]   ;;  %v1649_v27 = vld [vmem:[%s2194_s23 + $0x110] ss:$8 sps:$4 sm:$0xff]   ;;  %v1650_v28 = vld [vmem:[%s2194_s23 + $0x4] ss:$8 sps:$4 sm:$0xff]  }
  0x93   : > { %841 = vmatpush1.bf16.msra.mxu0 %v1624_v10  ;;  %v1652_v29 = vld [vmem:[%s2194_s23 + $0x104] ss:$8 sps:$4 sm:$0xff]   ;;  %v1654_v30 = vld [vmem:[%s2194_s23] ss:$8 sps:$4 sm:$0xff]   ;;  %v1656_v32 = vld [vmem:[%s2194_s23 + $0xf4] ss:$8 sps:$4 sm:$0xff]  }
  0x94   : > { %914 = vmatpush1.bf16.msra.mxu1 %v1625_v11  ;;  %842 = vmatprep.subr.bf16.mxu0 %v1626_v12  ;;  %v1655_v31 = vld [vmem:[%s2194_s23 + $0x100] ss:$8 sps:$4 sm:$0xff]   ;;  %v1658_v33 = vld [vmem:[%s2194_s23 + $0x1f4] ss:$8 sps:$4 sm:$0xff]   ;;  %v1660_v34 = vld [vmem:[%s2194_s23 + $0xf0] ss:$8 sps:$4 sm:$0xff]  }
  0x95   : > { %915 = vmatprep.subr.bf16.mxu1 %v1628_v13  ;;  %v1661_v35 = vld [vmem:[%s2194_s23 + $0x1f0] ss:$8 sps:$4 sm:$0xff]   ;;  %v1662_v36 = vld [vmem:[%s2194_s23 + $0xe4] ss:$8 sps:$4 sm:$0xff]   ;;  %v1666_v38 = vld [vmem:[%s2194_s23 + $0xe0] ss:$8 sps:$4 sm:$0xff]  }
  0x96   : > { %v1664_v37 = vld [vmem:[%s2194_s23 + $0x1e4] ss:$8 sps:$4 sm:$0xff]   ;;  %v1667_v39 = vld [vmem:[%s2194_s23 + $0x1e0] ss:$8 sps:$4 sm:$0xff]   ;;  %v1668_v40 = vld [vmem:[%s2194_s23 + $0xd4] ss:$8 sps:$4 sm:$0xff]  }
  0x97   : > { %843 = vmatpush1.bf16.msra.mxu0 %v1630_v14  ;;  %v1670_v41 = vld [vmem:[%s2194_s23 + $0x1d4] ss:$8 sps:$4 sm:$0xff]   ;;  %v1672_v42 = vld [vmem:[%s2194_s23 + $0xd0] ss:$8 sps:$4 sm:$0xff]   ;;  %v1674_v44 = vld [vmem:[%s2194_s23 + $0xc4] ss:$8 sps:$4 sm:$0xff]  }
  0x98   : > { %916 = vmatpush1.bf16.msra.mxu1 %v1631_v15  ;;  %844 = vmatprep.subr.bf16.mxu0 %v1632_v16  ;;  %v1673_v43 = vld [vmem:[%s2194_s23 + $0x1d0] ss:$8 sps:$4 sm:$0xff]   ;;  %v1676_v45 = vld [vmem:[%s2194_s23 + $0x1c4] ss:$8 sps:$4 sm:$0xff]   ;;  %v1678_v46 = vld [vmem:[%s2194_s23 + $0xc0] ss:$8 sps:$4 sm:$0xff]  }
  0x99   : > { %917 = vmatprep.subr.bf16.mxu1 %v1634_v17  ;;  %v1679_v47 = vld [vmem:[%s2194_s23 + $0x1c0] ss:$8 sps:$4 sm:$0xff]   ;;  %v1680_v48 = vld [vmem:[%s2194_s23 + $0xb4] ss:$8 sps:$4 sm:$0xff]   ;;  %v1684_v52 = vld [vmem:[%s2194_s23 + $0xb0] ss:$8 sps:$4 sm:$0xff]  }
  0x9a   : > { %v1706_v49 = vld [vmem:[#allocation2 + $0x4] ss:$16 sps:$4 sm:$0xff]   ;;  %v1709_v51 = vld [vmem:[#allocation2 + $0xc] ss:$16 sps:$4 sm:$0xff]   ;;  %v1685_v53 = vld [vmem:[%s2194_s23 + $0x1b0] ss:$8 sps:$4 sm:$0xff]  }
  0x9b   : > { %845 = vmatpush1.bf16.msra.mxu0 %v1636_v18  ;;  %v1682_v50 = vld [vmem:[%s2194_s23 + $0x1b4] ss:$8 sps:$4 sm:$0xff]   ;;  %868 = vmatprep.mubr.bf16.mxu0 %v1706_v49  ;;  %v1686_v54 = vld [vmem:[%s2194_s23 + $0xa4] ss:$8 sps:$4 sm:$0xff]   ;;  %v1690_v56 = vld [vmem:[%s2194_s23 + $0xa0] ss:$8 sps:$4 sm:$0xff]  }
  0x9c   : > { %918 = vmatpush1.bf16.msra.mxu1 %v1637_v19  ;;  %846 = vmatprep.subr.bf16.mxu0 %v1638_v20  ;;  %v1688_v55 = vld [vmem:[%s2194_s23 + $0x1a4] ss:$8 sps:$4 sm:$0xff]   ;;  %v1691_v57 = vld [vmem:[%s2194_s23 + $0x1a0] ss:$8 sps:$4 sm:$0xff]   ;;  %v1692_v58 = vld [vmem:[%s2194_s23 + $0x94] ss:$8 sps:$4 sm:$0xff]  }
  0x9d   : > { %919 = vmatprep.subr.bf16.mxu1 %v1640_v21  ;;  %941 = vmatprep.mubr.bf16.mxu1 %v1709_v51  ;;  %v1694_v59 = vld [vmem:[%s2194_s23 + $0x194] ss:$8 sps:$4 sm:$0xff]   ;;  %v1696_v60 = vld [vmem:[%s2194_s23 + $0x90] ss:$8 sps:$4 sm:$0xff]   ;;  %v1698_v62 = vld [vmem:[%s2194_s23 + $0x84] ss:$8 sps:$4 sm:$0xff]  }
  0x9e   : > { %v1697_v61 = vld [vmem:[%s2194_s23 + $0x190] ss:$8 sps:$4 sm:$0xff]   ;;  %v1700_v63 = vld [vmem:[%s2194_s23 + $0x184] ss:$8 sps:$4 sm:$0xff]   ;;  %v1702_v0 = vld [vmem:[%s2194_s23 + $0x80] ss:$8 sps:$4 sm:$0xff]  }
  0x9f   : > { %847 = vmatpush1.bf16.msra.mxu0 %v1642_v22  ;;  %v1703_v1 = vld [vmem:[%s2194_s23 + $0x180] ss:$8 sps:$4 sm:$0xff]   ;;  %v1710_v4 = vld [vmem:[#allocation2 + $0x24] ss:$16 sps:$4 sm:$0xff]   ;;  %v1712_v5 = vld [vmem:[#allocation2 + $0x2c] ss:$16 sps:$4 sm:$0xff]  }
  0xa0   : > { %920 = vmatpush1.bf16.msra.mxu1 %v1643_v23  ;;  %848 = vmatprep.subr.bf16.mxu0 %v1644_v24  ;;  %v1704_v2 = vld [vmem:[#allocation2] ss:$16 sps:$4 sm:$0xff]   ;;  %v1707_v3 = vld [vmem:[#allocation2 + $0x8] ss:$16 sps:$4 sm:$0xff]   ;;  %v1716_v8 = vld [vmem:[#allocation2 + $0x44] ss:$16 sps:$4 sm:$0xff]  }
  0xa1   : > { %921 = vmatprep.subr.bf16.mxu1 %v1646_v25  ;;  %v1714_v6 = vld [vmem:[#allocation2 + $0x20] ss:$16 sps:$4 sm:$0xff]   ;;  %v1715_v7 = vld [vmem:[#allocation2 + $0x28] ss:$16 sps:$4 sm:$0xff]   ;;  %v1718_v9 = vld [vmem:[#allocation2 + $0x4c] ss:$16 sps:$4 sm:$0xff]  }
  0xa2   : > { %v1720_v10 = vld [vmem:[#allocation2 + $0x40] ss:$16 sps:$4 sm:$0xff]   ;;  %v1721_v11 = vld [vmem:[#allocation2 + $0x48] ss:$16 sps:$4 sm:$0xff]   ;;  %v1722_v12 = vld [vmem:[#allocation2 + $0x64] ss:$16 sps:$4 sm:$0xff]  }
  0xa3   : > { %849 = vmatpush1.bf16.msra.mxu0 %v1648_v26  ;;  %v1724_v13 = vld [vmem:[#allocation2 + $0x6c] ss:$16 sps:$4 sm:$0xff]   ;;  %v1726_v14 = vld [vmem:[#allocation2 + $0x60] ss:$16 sps:$4 sm:$0xff]   ;;  %v1727_v15 = vld [vmem:[#allocation2 + $0x68] ss:$16 sps:$4 sm:$0xff]  }
  0xa4   : > { %922 = vmatpush1.bf16.msra.mxu1 %v1649_v27  ;;  %850 = vmatprep.subr.bf16.mxu0 %v1650_v28  ;;  %p350_p2 = scmp.lt.s32.totalorder %s1442_s15, 3  ;;  %s2376_s24 = scalar_lea.vmem [#allocation10], %s1438_s10 }
  0xa5   : > { %923 = vmatprep.subr.bf16.mxu1 %v1652_v29  ;;  %s1531_s20 = sshll.u32 %s2078_s12, 8  ;;  %s1286_s25 = sshll.u32 %s2376_s24, 4  ;;  %s2408_s25 = int_to_ptr.vmem [resolvable:$true] %s1286_s25 }
  0xa6   : > { %s2497_s15 = smov (!%p350_p2, %s1442_s15), 3  ;;  %s2405_s26 = scalar_lea.hbm %s2459_s5, %s1531_s20 }
  0xa7   : > { %851 = vmatpush1.bf16.msra.mxu0 %v1654_v30  ;;  %s352_s29 = scalar_lea.vmem %s2457_s3, %s2497_s15  ;;  %s1273_s8 = scalar_lea.sflag [#allocation4], %s2181_s13 }
  0xa8   : > { %924 = vmatpush1.bf16.msra.mxu1 %v1655_v31  ;;  %852 = vmatprep.subr.bf16.mxu0 %v1656_v32  ;;  %s1874_s0 = scalar_lea.vmem %s2408_s25, 2048  ;;  %p2488_p12 = scmp.ne.s32.totalorder %s2478_s7, 0 }
  0xa9   : > { %925 = vmatprep.subr.bf16.mxu1 %v1658_v33  ;;  %p1875_p3 = scmp.ne.s32.totalorder %s2408_s25, %s1874_s0  ;;  %s1958_s10 = smov [#allocation10]  }
  0xaa   : > { %s1878_s30 = sshll.u32 %s1958_s10, 4  ;;  %s1879_s30 = int_to_ptr.vmem [resolvable:$false] %s1878_s30 }
  0xab   : > { %853 = vmatpush2.bf16.msra.mxu0 %v1660_v34  ;;  %p1876_p0 = pnand %p1875_p3, %p2488_p12  ;;  %p1881_p5 = scmp.lt.s32.totalorder %s2408_s25, %s1879_s30 }
  0xac   : > { %926 = vmatpush2.bf16.msra.mxu1 %v1661_v35  ;;  %854 = vmatprep.subr.bf16.mxu0 %v1662_v36 }
  0xad   : > { %927 = vmatprep.subr.bf16.mxu1 %v1664_v37  ;;  %p1877_p1 = pneg %p1876_p0 }
  0xaf   : > { %855 = vmatpush2.bf16.msra.mxu0 %v1666_v38 }
  0xb0   : > { %928 = vmatpush2.bf16.msra.mxu1 %v1667_v39  ;;  %856 = vmatprep.subr.bf16.mxu0 %v1668_v40 }
  0xb1   : > { %929 = vmatprep.subr.bf16.mxu1 %v1670_v41 }
  0xb3   : > { %857 = vmatpush2.bf16.msra.mxu0 %v1672_v42 }
  0xb4   : > { %930 = vmatpush2.bf16.msra.mxu1 %v1673_v43  ;;  %858 = vmatprep.subr.bf16.mxu0 %v1674_v44 }
  0xb5   : > { %931 = vmatprep.subr.bf16.mxu1 %v1676_v45 }
  0xb7   : > { %859 = vmatpush2.bf16.msra.mxu0 %v1678_v46 }
  0xb8   : > { %932 = vmatpush2.bf16.msra.mxu1 %v1679_v47  ;;  %860 = vmatprep.subr.bf16.mxu0 %v1680_v48 }
  0xb9   : > { %933 = vmatprep.subr.bf16.mxu1 %v1682_v50 }
  0xbb   : > { %861 = vmatpush2.bf16.msra.mxu0 %v1684_v52 }
  0xbc   : > { %934 = vmatpush2.bf16.msra.mxu1 %v1685_v53  ;;  %862 = vmatprep.subr.bf16.mxu0 %v1686_v54 }
  0xbd   : > { %935 = vmatprep.subr.bf16.mxu1 %v1688_v55 }
  0xbf   : > { %863 = vmatpush2.bf16.msra.mxu0 %v1690_v56 }
  0xc0   : > { %936 = vmatpush2.bf16.msra.mxu1 %v1691_v57  ;;  %864 = vmatprep.subr.bf16.mxu0 %v1692_v58 }
  0xc1   : > { %937 = vmatprep.subr.bf16.mxu1 %v1694_v59 }
  0xc3   : > { %865 = vmatpush2.bf16.msra.mxu0 %v1696_v60 }
  0xc4   : > { %938 = vmatpush2.bf16.msra.mxu1 %v1697_v61  ;;  %866 = vmatprep.subr.bf16.mxu0 %v1698_v62 }
  0xc5   : > { %939 = vmatprep.subr.bf16.mxu1 %v1700_v63 }
  0xc7   : > { %867 = vmatpush2.bf16.msra.mxu0 %v1702_v0 }
  0xc8   : > { %940 = vmatpush2.bf16.msra.mxu1 %v1703_v1 }
  0xca   : > { %869 = vmatmul.mubr.bf16.vlgmr.msra.gmra.mxu0 %v1704_v2 }
  0xcb   : > { %942 = vmatmul.mubr.bf16.vlgmr.msra.gmra.mxu1 %v1707_v3  ;;  %878 = vmatprep.mubr.bf16.mxu0 %v1710_v4 }
  0xcc   : > { %951 = vmatprep.mubr.bf16.mxu1 %v1712_v5 }
  0xd2   : > { %879 = vmatmul.mubr.bf16.gmra.mxu0 %v1714_v6 }
  0xd3   : > { %952 = vmatmul.mubr.bf16.gmra.mxu1 %v1715_v7  ;;  %888 = vmatprep.mubr.bf16.mxu0 %v1716_v8 }
  0xd4   : > { %961 = vmatprep.mubr.bf16.mxu1 %v1718_v9 }
  0xda   : > { %889 = vmatmul.mubr.bf16.gmra.mxu0 %v1720_v10 }
  0xdb   : > { %962 = vmatmul.mubr.bf16.gmra.mxu1 %v1721_v11  ;;  %898 = vmatprep.mubr.bf16.mxu0 %v1722_v12 }
  0xdc   : > { %971 = vmatprep.mubr.bf16.mxu1 %v1724_v13 }
  0xe2   : > { %899 = vmatmul.mubr.bf16.gmra.mxu0 %v1726_v14 }
  0xe3   : > { %972 = vmatmul.mubr.bf16.gmra.mxu1 %v1727_v15 }
 0x18a   : > { %v870_v16 = vpop.f32.mrf.mxu0 }
 0x18b   : > { %v943_v17 = vpop.f32.mrf.mxu1 }
 0x18c   : > { %v872_v18 = vpop.f32.mrf.mxu0  ;;  %v2269_v31 = vadd.f32 %v943_v17, %v870_v16 }
 0x18d   : > { %v945_v19 = vpop.f32.mrf.mxu1 }
 0x18e   : > { %v874_v20 = vpop.f32.mrf.mxu0  ;;  %v2275_v36 = vadd.f32 %v945_v19, %v872_v18  ;;  %v1008_v42 = vmul.f32 %v2269_v31, %v2269_v31 }
 0x18f   : > { %v947_v21 = vpop.f32.mrf.mxu1 }
 0x190   : > { %v876_v22 = vpop.f32.mrf.mxu0  ;;  %v2267_v28 = vadd.f32 %v947_v21, %v874_v20  ;;  %v1009_v49 = vmul.f32 %v2275_v36, %v2275_v36 }
 0x191   : > { %v949_v23 = vpop.f32.mrf.mxu1 }
 0x192   : > { %v880_v24 = vpop.f32.mrf.mxu0  ;;  %v2271_v32 = vadd.f32 %v949_v23, %v876_v22  ;;  %v1010_v37 = vmul.f32 %v2267_v28, %v2267_v28  ;;  %v982_v50 = vadd.f32 %v2267_v28, %v2269_v31 }
 0x193   : > { %v953_v25 = vpop.f32.mrf.mxu1 }
 0x194   : > { %v882_v26 = vpop.f32.mrf.mxu0  ;;  %v2273_v33 = vadd.f32 %v953_v25, %v880_v24  ;;  %v1011_v43 = vmul.f32 %v2271_v32, %v2271_v32  ;;  %v1024_v51 = vadd.f32 %v1010_v37, %v1008_v42  ;;  %v995_v57 = vadd.f32 %v2271_v32, %v2275_v36 }
 0x195   : > { %v955_v27 = vpop.f32.mrf.mxu1 }
 0x196   : > { %v884_v29 = vpop.f32.mrf.mxu0  ;;  %v2279_v38 = vadd.f32 %v955_v27, %v882_v26  ;;  %v1012_v44 = vmul.f32 %v2273_v33, %v2273_v33  ;;  %v983_v58 = vadd.f32 %v982_v50, %v2273_v33  ;;  %v1037_v60 = vadd.f32 %v1011_v43, %v1009_v49 }
 0x197   : > { %v957_v30 = vpop.f32.mrf.mxu1 }
 0x198   : > { %v886_v34 = vpop.f32.mrf.mxu0  ;;  %v2281_v39 = vadd.f32 %v957_v30, %v884_v29  ;;  %v1013_v52 = vmul.f32 %v2279_v38, %v2279_v38  ;;  %v1025_v61 = vadd.f32 %v1024_v51, %v1012_v44  ;;  %v996_v2 = vadd.f32 %v995_v57, %v2279_v38 }
 0x199   : > { %v959_v35 = vpop.f32.mrf.mxu1 }
 0x19a   : > { %v890_v40 = vpop.f32.mrf.mxu0  ;;  %v2289_v45 = vadd.f32 %v959_v35, %v886_v34  ;;  %v1014_v53 = vmul.f32 %v2281_v39, %v2281_v39  ;;  %v984_v3 = vadd.f32 %v983_v58, %v2281_v39  ;;  %v1038_v5 = vadd.f32 %v1037_v60, %v1013_v52 }
 0x19b   : > { %v963_v41 = vpop.f32.mrf.mxu1 }
 0x19c   : > { %v2291_v46 = vadd.f32 %v963_v41, %v890_v40  ;;  %v892_v47 = vpop.f32.mrf.mxu0  ;;  %v1015_v62 = vmul.f32 %v2289_v45, %v2289_v45  ;;  %v1026_v6 = vadd.f32 %v1025_v61, %v1014_v53  ;;  %v997_v11 = vadd.f32 %v996_v2, %v2289_v45 }
 0x19d   : > { %v965_v48 = vpop.f32.mrf.mxu1 }
 0x19e   : > { %v2301_v54 = vadd.f32 %v965_v48, %v892_v47  ;;  %v894_v55 = vpop.f32.mrf.mxu0  ;;  %v1016_v63 = vmul.f32 %v2291_v46, %v2291_v46  ;;  %v985_v12 = vadd.f32 %v984_v3, %v2291_v46  ;;  %v1039_v14 = vadd.f32 %v1038_v5, %v1015_v62 }
 0x19f   : > { %v967_v56 = vpop.f32.mrf.mxu1 }
 0x1a0   : > { %v2306_v59 = vadd.f32 %v967_v56, %v894_v55  ;;  %v896_v0 = vpop.f32.mrf.mxu0  ;;  %v1017_v7 = vmul.f32 %v2301_v54, %v2301_v54  ;;  %v1027_v15 = vadd.f32 %v1026_v6, %v1016_v63  ;;  %v998_v19 = vadd.f32 %v997_v11, %v2301_v54 }
 0x1a1   : > { %v969_v1 = vpop.f32.mrf.mxu1 }
 0x1a2   : > { %v2314_v4 = vadd.f32 %v969_v1, %v896_v0  ;;  %v1018_v8 = vmul.f32 %v2306_v59, %v2306_v59  ;;  %v900_v9 = vpop.f32.mrf.mxu0  ;;  %v986_v20 = vadd.f32 %v985_v12, %v2306_v59  ;;  %v1040_v23 = vadd.f32 %v1039_v14, %v1017_v7 }
 0x1a3   : > { %v973_v10 = vpop.f32.mrf.mxu1 }
 0x1a4   : > { %v2322_v13 = vadd.f32 %v973_v10, %v900_v9  ;;  %v1019_v16 = vmul.f32 %v2314_v4, %v2314_v4  ;;  %v902_v17 = vpop.f32.mrf.mxu0  ;;  %v1028_v24 = vadd.f32 %v1027_v15, %v1018_v8  ;;  %v999_v27 = vadd.f32 %v998_v19, %v2314_v4 }
 0x1a5   : > { %v975_v18 = vpop.f32.mrf.mxu1 }
 0x1a6   : > { %v1020_v21 = vmul.f32 %v2322_v13, %v2322_v13  ;;  %v2330_v22 = vadd.f32 %v975_v18, %v902_v17  ;;  %v904_v25 = vpop.f32.mrf.mxu0  ;;  %v987_v29 = vadd.f32 %v986_v20, %v2322_v13  ;;  %v1041_v35 = vadd.f32 %v1040_v23, %v1019_v16 }
 0x1a7   : > { %v977_v26 = vpop.f32.mrf.mxu1 }
 0x1a8   : > { %v1021_v30 = vmul.f32 %v2330_v22, %v2330_v22  ;;  %v2336_v34 = vadd.f32 %v977_v26, %v904_v25  ;;  %v1029_v37 = vadd.f32 %v1028_v24, %v1020_v21  ;;  %v906_v40 = vpop.f32.mrf.mxu0  ;;  %v1000_v42 = vadd.f32 %v999_v27, %v2330_v22 }
 0x1a9   : > { %v979_v41 = vpop.f32.mrf.mxu1 }
 0x1aa   : > { %v988_v43 = vadd.f32 %v987_v29, %v2336_v34  ;;  %v1022_v44 = vmul.f32 %v2336_v34, %v2336_v34  ;;  %v2342_v47 = vadd.f32 %v979_v41, %v906_v40  ;;  %v1042_v48 = vadd.f32 %v1041_v35, %v1021_v30 }
 0x1ab   : > { %v1957_v35 = vmov 1966171168   ;;  %v1071_v40 = vlaneseq }
 0x1ac   : > { %v989_v49 = vrot.slane %v988_v43, 4  ;;  %v1030_v50 = vadd.f32 %v1029_v37, %v1022_v44  ;;  %v1001_v51 = vadd.f32 %v1000_v42, %v2342_v47  ;;  %v1023_v52 = vmul.f32 %v2342_v47, %v2342_v47 }
 0x1ad   : > { %v1069_v37 = vunpack.c.l.s4 %v1957_v35  ;;  %v1072_v42 = vshrl.u32 %v1071_v40, 7 }
 0x1ae   : > { %v990_v53 = vadd.f32 %v989_v49, %v988_v43  ;;  %v1031_v55 = vrot.slane %v1030_v50, 4  ;;  %v1002_v56 = vrot.slane %v1001_v51, 4  ;;  %v1043_v57 = vadd.f32 %v1042_v48, %v1023_v52 }
 0x1af   : > { %v1070_v41 = vunpack.c.0.s8 %v1069_v37 }
 0x1b0   : > { %v991_v58 = vrot.slane %v990_v53, 2  ;;  %v1032_v60 = vadd.f32 %v1031_v55, %v1030_v50  ;;  %v1003_v61 = vadd.f32 %v1002_v56, %v1001_v51  ;;  %v1044_v62 = vrot.slane %v1043_v57, 4  ;;  %v1060_v51 = vld [vmem:[%s352_s29] sm:$0x3] }
 0x1b1   : > { %v1073_v44 = vsub.s32 %v1070_v41, %v1072_v42  ;;  %v1092_v55 = vsub.s32 1, %v1072_v42 }
 0x1b2   : > { %v992_v63 = vadd.f32 %v991_v58, %v990_v53  ;;  %v1033_v0 = vrot.slane %v1032_v60, 2  ;;  %v1004_v1 = vrot.slane %v1003_v61, 2  ;;  %v1045_v2 = vadd.f32 %v1044_v62, %v1043_v57 }
 0x1b3   : > { %v1088_v53 = vsub.s32 0, %v1072_v42 }
 0x1b4   : > { %v993_v3 = vrot.slane %v992_v63, 1  ;;  %v1034_v5 = vadd.f32 %v1033_v0, %v1032_v60  ;;  %v1005_v6 = vadd.f32 %v1004_v1, %v1003_v61  ;;  %v1046_v7 = vrot.slane %v1045_v2, 2  ;;  %v1084_v0 = vld [vmem:[%s2197_s28] sm:$0x3] }
 0x1b6   : > { %v994_v8 = vadd.f32 %v993_v3, %v992_v63  ;;  %v1035_v9 = vrot.slane %v1034_v5, 1  ;;  %v1006_v10 = vrot.slane %v1005_v6, 1  ;;  %v1047_v11 = vadd.f32 %v1046_v7, %v1045_v2 }
 0x1b8   : > { %v1036_v12 = vadd.f32 %v1035_v9, %v1034_v5  ;;  %v1050_v14 = vmul.f32 0.015625, %v994_v8  ;;  %v1007_v15 = vadd.f32 %v1006_v10, %v1005_v6  ;;  %v1048_v16 = vrot.slane %v1047_v11, 1 }
 0x1ba   : > { %v1052_v17 = vmul.f32 0.015625, %v1036_v12  ;;  %v1054_v18 = vmul.f32 %v1050_v14, %v1050_v14  ;;  %v1049_v19 = vadd.f32 %v1048_v16, %v1047_v11  ;;  %v1051_v20 = vmul.f32 0.015625, %v1007_v15 }
 0x1bc   : > { %v1056_v21 = vsub.f32 %v1052_v17, %v1054_v18  ;;  %v1053_v23 = vmul.f32 0.015625, %v1049_v19  ;;  %v1055_v24 = vmul.f32 %v1051_v20, %v1051_v20 }
 0x1be   : > { %v1058_v25 = vmax.f32 %v1056_v21, 0.0  ;;  %v1057_v26 = vsub.f32 %v1053_v23, %v1055_v24 }
 0x1c0   : > { %v1061_v27 = vadd.f32 1e-05, %v1058_v25  ;;  %v1059_v29 = vmax.f32 %v1057_v26, 0.0 }
 0x1c2   : > { %v1062_v30 = vadd.f32 1e-05, %v1059_v29  ;;  %1728 = vrsqrt.f32 %v1061_v27 }
 0x1c4   : > { %1730 = vrsqrt.f32 %v1062_v30 }
 0x1cf   : > { %v1729_v43 = vpop.eup %1728 }
 0x1d1   : > { %v1731_v48 = vpop.eup %1730 }
 0x1d2   : > { %v1067_v49 = vcombine.low %v1729_v43, %v1731_v48 }
 0x1d4   : > { %v1074_v50 = vrot.slane %v1067_v49, %v1073_v44 }
 0x1d6   : > { %v1081_v52 = vrot.slane %v1074_v50, %v1073_v44 }
 0x1d8   : > { %v1083_v56 = vmul.f32 %v1081_v52, %v1060_v51 }
 0x1da   : > { %v1089_v57 = vrot.slane %v1083_v56, %v1088_v53  ;;  %v1093_v58 = vrot.slane %v1083_v56, %v1092_v55 }
 0x1dc   : > { %v1096_v60 = vmul.f32 %v1089_v57, %v1050_v14  ;;  %v1097_v61 = vmul.f32 %v1093_v58, %v1051_v20  ;;  %v1117_v3 = vmul.f32 %v1089_v57, %v2269_v31  ;;  %v1118_v7 = vmul.f32 %v1093_v58, %v2275_v36 }
 0x1dd   : > { %v1119_v8 = vmul.f32 %v1089_v57, %v2267_v28  ;;  %v1120_v10 = vmul.f32 %v1093_v58, %v2271_v32  ;;  %v1121_v12 = vmul.f32 %v1089_v57, %v2273_v33  ;;  %v1122_v15 = vmul.f32 %v1093_v58, %v2279_v38 }
 0x1de   : > { %v1100_v62 = vcombine.low %v1096_v60, %v1097_v61  ;;  %v1123_v17 = vmul.f32 %v1089_v57, %v2281_v39  ;;  %v1124_v19 = vmul.f32 %v1093_v58, %v2289_v45  ;;  %v1125_v28 = vmul.f32 %v1089_v57, %v2291_v46 }
 0x1df   : > { %v1126_v32 = vmul.f32 %v1093_v58, %v2301_v54  ;;  %v1127_v25 = vmul.f32 %v1089_v57, %v2306_v59  ;;  %v1128_v39 = vmul.f32 %v1093_v58, %v2314_v4  ;;  %v1129_v45 = vmul.f32 %v1089_v57, %v2322_v13 }
 0x1e0   : > { %v1107_v63 = vrot.slane %v1100_v62, %v1073_v44  ;;  %v1130_v35 = vmul.f32 %v1093_v58, %v2330_v22  ;;  %v1131_v59 = vmul.f32 %v1089_v57, %v2336_v34  ;;  %v1132_v4 = vmul.f32 %v1093_v58, %v2342_v47  ;;  %v1224_v57 = vld [vmem:[%s2186_s14] sm:$0xff]  ;;  %v1225_v62 = vld [vmem:[%s2186_s14 + $0x8] sm:$0xff] }
 0x1e2   : > { %v1114_v1 = vrot.slane %v1107_v63, %v1073_v44 }
 0x1e4   : > { %v1116_v2 = vsub.f32 %v1084_v0, %v1114_v1 }
 0x1e6   : > { %v1137_v5 = vrot.slane %v1116_v2, %v1088_v53  ;;  %v1141_v6 = vrot.slane %v1116_v2, %v1092_v55  ;;  %v1226_v2 = vld [vmem:[%s2186_s14 + $0x10] sm:$0xff] }
 0x1e8   : > { %v1144_v9 = vadd.f32 %v1137_v5, %v1117_v3  ;;  %v1145_v11 = vadd.f32 %v1141_v6, %v1118_v7  ;;  %v1146_v14 = vadd.f32 %v1137_v5, %v1119_v8  ;;  %v1147_v16 = vadd.f32 %v1141_v6, %v1120_v10  ;;  %v1227_v7 = vld [vmem:[%s2186_s14 + $0x18] sm:$0xff] }
 0x1e9   : > { %v1148_v18 = vadd.f32 %v1137_v5, %v1121_v12  ;;  %v1149_v20 = vadd.f32 %v1141_v6, %v1122_v15  ;;  %v1150_v21 = vadd.f32 %v1137_v5, %v1123_v17  ;;  %v1151_v24 = vadd.f32 %v1141_v6, %v1124_v19  ;;  %v1228_v12 = vld [vmem:[%s2186_s14 + $0x20] sm:$0xff] }
 0x1ea   : > { %v1160_v31 = vmul.f32 0.5, %v1144_v9  ;;  %v1161_v36 = vmul.f32 0.5, %v1145_v11  ;;  %v1162_v23 = vmul.f32 0.5, %v1146_v14  ;;  %v1163_v33 = vmul.f32 0.5, %v1147_v16 }
 0x1eb   : > { %v1152_v38 = vadd.f32 %v1137_v5, %v1125_v28  ;;  %v1164_v26 = vmul.f32 0.5, %v1148_v18  ;;  %v1153_v27 = vadd.f32 %v1141_v6, %v1126_v32  ;;  %v1165_v29 = vmul.f32 0.5, %v1149_v20  ;;  %v1229_v18 = vld [vmem:[%s2186_s14 + $0x28] sm:$0xff]  ;;  %v1230_v28 = vld [vmem:[%s2186_s14 + $0x30] sm:$0xff] }
 0x1ec   : > { %1732 = vtanh.f32 %v1160_v31  ;;  %v1154_v30 = vadd.f32 %v1137_v5, %v1127_v25  ;;  %v1166_v46 = vmul.f32 0.5, %v1150_v21  ;;  %v1155_v54 = vadd.f32 %v1141_v6, %v1128_v39 }
 0x1ed   : > { %1734 = vtanh.f32 %v1161_v36  ;;  %v1167_v37 = vmul.f32 0.5, %v1151_v24  ;;  %v1156_v40 = vadd.f32 %v1137_v5, %v1129_v45  ;;  %v1168_v41 = vmul.f32 0.5, %v1152_v38 }
 0x1ee   : > { %1736 = vtanh.f32 %v1162_v23  ;;  %v1157_v42 = vadd.f32 %v1141_v6, %v1130_v35  ;;  %v1169_v43 = vmul.f32 0.5, %v1153_v27  ;;  %v1158_v44 = vadd.f32 %v1137_v5, %v1131_v59  ;;  %v1232_v27 = vld [vmem:[%s2186_s14 + $0x40] sm:$0xff]  ;;  %v1233_v35 = vld [vmem:[%s2186_s14 + $0x48] sm:$0xff] }
 0x1ef   : > { %1738 = vtanh.f32 %v1163_v33  ;;  %v1170_v13 = vmul.f32 0.5, %v1154_v30  ;;  %v1159_v48 = vadd.f32 %v1141_v6, %v1132_v4  ;;  %v1171_v49 = vmul.f32 0.5, %v1155_v54  ;;  %v1231_v33 = vld [vmem:[%s2186_s14 + $0x38] sm:$0xff] }
 0x1f0   : > { %1740 = vtanh.f32 %v1164_v26  ;;  %v1172_v22 = vmul.f32 0.5, %v1156_v40  ;;  %v1173_v50 = vmul.f32 0.5, %v1157_v42  ;;  %v1174_v34 = vmul.f32 0.5, %v1158_v44 }
 0x1f1   : > { %1742 = vtanh.f32 %v1165_v29  ;;  %v1175_v51 = vmul.f32 0.5, %v1159_v48 }
 0x1f2   : > { %1744 = vtanh.f32 %v1166_v46 }
 0x1f3   : > { %1746 = vtanh.f32 %v1167_v37 }
 0x1f4   : > { %1748 = vtanh.f32 %v1168_v41  ;;  %v1234_v41 = vld [vmem:[%s2186_s14 + $0x50] sm:$0xff] }
 0x1f5   : > { %1750 = vtanh.f32 %v1169_v43 }
 0x1f6   : > { %1752 = vtanh.f32 %v1170_v13  ;;  %v1235_v13 = vld [vmem:[%s2186_s14 + $0x58] sm:$0xff] }
 0x1f7   : > { %1754 = vtanh.f32 %v1171_v49 }
 0x1f8   : > { %1756 = vtanh.f32 %v1172_v22 }
 0x1f9   : > { %v1733_v47 = vpop.eup %1732  ;;  %1758 = vtanh.f32 %v1173_v50 }
 0x1fa   : > { %v1735_v52 = vpop.eup %1734  ;;  %1760 = vtanh.f32 %v1174_v34  ;;  %v1192_v53 = vmul.f32 0.5, %v1733_v47  ;;  %v1236_v34 = vld [vmem:[%s2186_s14 + $0x60] sm:$0xff] }
 0x1fb   : > { %v1737_v55 = vpop.eup %1736  ;;  %1762 = vtanh.f32 %v1175_v51  ;;  %v1193_v56 = vmul.f32 0.5, %v1735_v52 }
 0x1fc   : > { %v1739_v58 = vpop.eup %1738  ;;  %v1194_v60 = vmul.f32 0.5, %v1737_v55  ;;  %v1208_v61 = vadd.f32 0.5, %v1192_v53  ;;  %v1237_v55 = vld [vmem:[%s2186_s14 + $0x68] sm:$0xff] }
 0x1fd   : > { %v1741_v63 = vpop.eup %1740  ;;  %v1195_v0 = vmul.f32 0.5, %v1739_v58  ;;  %v1209_v1 = vadd.f32 0.5, %v1193_v56 }
 0x1fe   : > { %v1743_v3 = vpop.eup %1742  ;;  %v1196_v5 = vmul.f32 0.5, %v1741_v63  ;;  %v1210_v6 = vadd.f32 0.5, %v1194_v60  ;;  %v1240_v8 = vmul.f32 %v1224_v57, %v1208_v61  ;;  %v1238_v60 = vld [vmem:[%s2186_s14 + $0x70] sm:$0xff]  ;;  %v1239_v63 = vld [vmem:[%s2186_s14 + $0x78] sm:$0xff]  ;;  %s1880_s14 = scalar_lea.vmem %s1879_s30, 4096 }
 0x1ff   : > { %v1745_v9 = vpop.eup %1744  ;;  %v1197_v10 = vmul.f32 0.5, %v1743_v3  ;;  %v1211_v11 = vadd.f32 0.5, %v1195_v0  ;;  %v1241_v14 = vmul.f32 %v1225_v62, %v1209_v1  ;;  %p1882_p9 = scmp.lt.s32.totalorder %s1880_s14, %s1874_s0 }
 0x200   : > { %v1747_v15 = vpop.eup %1746  ;;  %v1198_v16 = vmul.f32 0.5, %v1745_v9  ;;  %v1212_v17 = vadd.f32 0.5, %v1196_v5  ;;  %v1242_v31 = vmul.f32 %v1226_v2, %v1210_v6  ;;  %1256 = vst [vmem:[%s2376_s24] sm:$0xff] %v1240_v8 }
 0x201   : > { %v1749_v19 = vpop.eup %1748  ;;  %v1199_v20 = vmul.f32 0.5, %v1747_v15  ;;  %v1213_v36 = vadd.f32 0.5, %v1197_v10  ;;  %v1243_v21 = vmul.f32 %v1227_v7, %v1211_v11  ;;  %1257 = vst [vmem:[%s2376_s24 + $0x8] sm:$0xff] %v1241_v14  ;;  %p1883_p10 = por %p1882_p9, %p1881_p5 }
 0x202   : > { %v1751_v23 = vpop.eup %1750  ;;  %v1200_v32 = vmul.f32 0.5, %v1749_v19  ;;  %v1214_v24 = vadd.f32 0.5, %v1198_v16  ;;  %v1244_v25 = vmul.f32 %v1228_v12, %v1212_v17  ;;  %1258 = vst [vmem:[%s2376_s24 + $0x10] sm:$0xff] %v1242_v31 }
 0x203   : > { %v1753_v38 = vpop.eup %1752  ;;  %v1201_v26 = vmul.f32 0.5, %v1751_v23  ;;  %v1215_v39 = vadd.f32 0.5, %v1199_v20  ;;  %v1245_v29 = vmul.f32 %v1229_v18, %v1213_v36  ;;  %1259 = vst [vmem:[%s2376_s24 + $0x18] sm:$0xff] %v1243_v21  ;;  %p1884_p4 = pnand %p1883_p10, %p1877_p1 }
 0x204   : > { %v1755_v45 = vpop.eup %1754  ;;  %v1202_v30 = vmul.f32 0.5, %v1753_v38  ;;  %v1216_v46 = vadd.f32 0.5, %v1200_v32  ;;  %v1246_v54 = vmul.f32 %v1230_v28, %v1214_v24  ;;  %1260 = vst [vmem:[%s2376_s24 + $0x20] sm:$0xff] %v1244_v25 }
 0x205   : > { %v1757_v37 = vpop.eup %1756  ;;  %v1203_v59 = vmul.f32 0.5, %v1755_v45  ;;  %v1217_v40 = vadd.f32 0.5, %v1201_v26  ;;  %v1247_v4 = vmul.f32 %v1231_v33, %v1215_v39  ;;  %1261 = vst [vmem:[%s2376_s24 + $0x28] sm:$0xff] %v1245_v29 }
 0x206   : > { %v1759_v42 = vpop.eup %1758  ;;  %v1204_v43 = vmul.f32 0.5, %v1757_v37  ;;  %v1218_v44 = vadd.f32 0.5, %v1202_v30  ;;  %v1248_v48 = vmul.f32 %v1232_v27, %v1216_v46  ;;  %1262 = vst [vmem:[%s2376_s24 + $0x30] sm:$0xff] %v1246_v54 }
 0x207   : > { %v1761_v49 = vpop.eup %1760  ;;  %v1205_v22 = vmul.f32 0.5, %v1759_v42  ;;  %v1219_v50 = vadd.f32 0.5, %v1203_v59  ;;  %v1249_v51 = vmul.f32 %v1233_v35, %v1217_v40  ;;  %1263 = vst [vmem:[%s2376_s24 + $0x38] sm:$0xff] %v1247_v4 }
 0x208   : > { %v1763_v47 = vpop.eup %1762  ;;  %v1206_v52 = vmul.f32 0.5, %v1761_v49  ;;  %v1220_v53 = vadd.f32 0.5, %v1204_v43  ;;  %v1250_v56 = vmul.f32 %v1234_v41, %v1218_v44  ;;  %1264 = vst [vmem:[%s2376_s24 + $0x40] sm:$0xff] %v1248_v48 }
 0x209   : > { %v1207_v57 = vmul.f32 0.5, %v1763_v47  ;;  %v1221_v58 = vadd.f32 0.5, %v1205_v22  ;;  %v1251_v61 = vmul.f32 %v1235_v13, %v1219_v50  ;;  %1265 = vst [vmem:[%s2376_s24 + $0x48] sm:$0xff] %v1249_v51 }
 0x20a   : > { %v1222_v62 = vadd.f32 0.5, %v1206_v52  ;;  %v1252_v0 = vmul.f32 %v1236_v34, %v1220_v53  ;;  %1266 = vst [vmem:[%s2376_s24 + $0x50] sm:$0xff] %v1250_v56 }
 0x20b   : > { %v1223_v1 = vadd.f32 0.5, %v1207_v57  ;;  %v1253_v2 = vmul.f32 %v1237_v55, %v1221_v58  ;;  %1267 = vst [vmem:[%s2376_s24 + $0x58] sm:$0xff] %v1251_v61 }
 0x20c   : > { %v1254_v3 = vmul.f32 %v1238_v60, %v1222_v62  ;;  %1268 = vst [vmem:[%s2376_s24 + $0x60] sm:$0xff] %v1252_v0 }
 0x20d   : > { %v1255_v5 = vmul.f32 %v1239_v63, %v1223_v1  ;;  %1269 = vst [vmem:[%s2376_s24 + $0x68] sm:$0xff] %v1253_v2 }
 0x20e   : > { %1270 = vst [vmem:[%s2376_s24 + $0x70] sm:$0xff] %v1254_v3 }
 0x20f   : > { %1271 = vst [vmem:[%s2376_s24 + $0x78] sm:$0xff] %v1255_v5 }
 0x210   : > { %1887 = shalt.err (!%p1884_p4)
}
 0x211   : > { %s1888_s16 = scalar_lea.hbm %s2405_s26, 2048  ;;  %s1892_s17 = scalar_lea.hbm %s2459_s5, 4096 }
 0x212   : > { %p1889_p7 = scmp.ne.s32.totalorder %s2405_s26, %s1888_s16  ;;  %p1893_p8 = scmp.lt.s32.totalorder %s2405_s26, %s2459_s5 }
 0x213   : > { %p1894_p6 = scmp.lt.s32.totalorder %s1892_s17, %s1888_s16 }
 0x214   : > { %p1890_p11 = pnand %p1889_p7, %p2488_p12 }
 0x215   : > { %p1895_p2 = por %p1894_p6, %p1893_p8 }
 0x216   : > { %p1891_p13 = pneg %p1890_p11 }
 0x218   : > { %p1896_p3 = pnand %p1895_p2, %p1891_p13 }
 0x21a   : > { %1899 = shalt.err (!%p1896_p3)
}
 0x21b   : > { %s1959_s11 = smov 256   ;;  %s1960_s6 = smov 512  }
 0x21c   : > { %s1961_s29 = smov 16  }
 0x21d   : > { %1542 = dma.vmem_to_hbm [thread:$0]  (%p2488_p12), %s2408_s25, 2048, %s2405_s26, %s1273_s8, %s1959_s11, %s1960_s6, %s1961_s29  }
 0x21e PF: > { %s1301_s24 = sand.u32 1, %s1934_s18   ;;  %p2489_p0 = scmp.ne.s32.totalorder %s2479_s9, 0 }
 0x21f   : > { %p2490_p1 = scmp.ge.s32.totalorder %s1946_s21, 2  ;;  %s1302_s20 = scalar_lea.sflag [#allocation4], %s1301_s24 }
 0x221   : > { %p1559_p5 = pnand %p2490_p1, %p2489_p0 }
 0x223   : > { %p1560_p9 = pneg %p1559_p5 }
 0x225   : > { %1929 = dma.done.wait (%p1560_p9), %s1302_s20, 2048  }
 0x226   : > { %1931 = vsyncadd (%p1560_p9), %s1302_s20, 4294965248  ;;  %s2491_s12 = sld [smem:[#allocation15_spill]]  ;;  %p22_p10 = scmp.ge.s32.totalorder %s2013_s22, 4  }
 0x227   : > { %s2492_s20 = sld [smem:[#allocation16_spill]]  ;;  %s2493_s18 = smov %s1938_s19 }
 0x228   : > { %s2495_s21 = smov %s2013_s22  ;;  %24 = sbr.rel (!%p22_p10) target bundleno = 11 (0xb), region = 117 }
 0x22c   : > { %s2494_s19 = smov %s2491_s12 }
 0x22d   :  { %1307 = vsyncpa [#allocation3], 1 }
 0x22e   :  { %1309 = vsyncpa [#allocation3 + $0x1], 1 }
 0x22f   :  { %1310 = vsyncpa [#allocation6], 1 }
 0x230   :  { %1312 = vsyncpa [#allocation6 + $0x1], 1 }
 0x231   :  { %1313 = vsyncpa [#allocation9], 1 }
 0x232   :  { %1315 = vsyncpa [#allocation9 + $0x1], 1 }
 0x233   :  { %1316 = vsyncpa [#allocation4], 1 }
 0x234   :  { %1318 = vsyncpa [#allocation4 + $0x1], 1 }

</bundles_post_ra>
